<compile_context>
chip_gen: v7x
topology: tpu7x:2x2x1
jax: 0.10.0
libtpu: 0.0.40
codegen_flags: <defaults>
</compile_context>

<pallas_src>
import numpy as np
import jax
import jax.numpy as jnp
from jax import lax
from jax.experimental import pallas as pl
from jax.experimental.pallas import tpu as pltpu

# ----------------------------- configuration --------------------------------
VOCAB = 50
EMB = 16                  # embedding_dim
HID = 32                  # hidden_dim (bidirectional -> per-direction HID // 2)
H = HID // 2              # 16
T = 8                     # sequence length
N_SENT = 4                # sentences per pallas_call (grid axis)
TAG_TO_IX = {"B": 0, "I": 1, "O": 2, "START": 3, "STOP": 4}
K = len(TAG_TO_IX)
START = TAG_TO_IX["START"]
STOP = TAG_TO_IX["STOP"]
NEG = -10000.0

# packed parameter buffer layout (row offsets in the (PAR_ROWS, 128) buffer)
EP_OFF = 0                # (2V, 8H): embed @ W_ih per direction in packed gate cols
EP_ROWS = 104             # 2V = 100, padded to a multiple of 8
WHH_OFF = 104             # (2H, 8H): block-diagonal recurrent weights
B_ROW = 136               # (1, 8H): b_ih + b_hh, packed gate order
H0_ROW = 137              # (1, 2H): [h0_fwd | h0_bwd]
C0_ROW = 138              # (1, 2H)
BOUT_ROW = 139            # (1, K)
WOUT_OFF = 144            # (2H, K): hidden2tag weight (rows 0:H fwd, H:2H bwd)
TT_OFF = 176              # (K, K): transitions transposed, transT[p, n] = trans[n, p]
PAR_ROWS = 184

_DEF = lax.Precision.DEFAULT
_HIGHEST = lax.Precision.HIGHEST


# ------------------------- fused BiLSTM-CRF kernel ---------------------------
def _bilstm_crf_kernel(ids_ref,      # (N, T) int32  SMEM (scalar prefetch)
                       par_ref,      # (PAR_ROWS, 128) f32 VMEM, resident
                       out_ref):     # (1, 1, 128)   f32 VMEM out block
    n = pl.program_id(0)
    f32 = jnp.float32
    H2 = 2 * H                                   # packed hidden width (fwd|bwd)

    # ---- one-hot over [fwd ids | time-reversed bwd ids] ----------------------
    lane_v = lax.broadcasted_iota(jnp.int32, (1, EP_ROWS), 1)
    sub_t = lax.broadcasted_iota(jnp.int32, (T, EP_ROWS), 0)
    oh = jnp.zeros((T, EP_ROWS), f32)
    for t in range(T):
        id_f = ids_ref[n, t]
        id_b = ids_ref[n, T - 1 - t]
        hit = jnp.logical_or(lane_v == id_f, lane_v == id_b + VOCAB)    # (1, 2V)
        oh = oh + jnp.where(jnp.logical_and(sub_t == t, hit), 1.0, 0.0)

    # ---- hoisted gate input projection: ONE MXU matmul -----------------------
    ep = par_ref[EP_OFF:EP_OFF + EP_ROWS, :]                            # (2V, 8H)
    b_row = par_ref[B_ROW:B_ROW + 1, :]                                 # (1, 8H)
    proj = jnp.dot(oh, ep, preferred_element_type=f32,
                   precision=_HIGHEST) + b_row                          # (T, 8H)

    # ---- fused bidirectional LSTM recurrence (one dot / step) ----------------
    whh = par_ref[WHH_OFF:WHH_OFF + H2, :]                              # (2H, 8H)
    h = par_ref[H0_ROW:H0_ROW + 1, :][:, :H2]                           # (1, 2H)
    c = par_ref[C0_ROW:C0_ROW + 1, :][:, :H2]                           # (1, 2H)

    sub_h = lax.broadcasted_iota(jnp.int32, (T, H2), 0)
    lane_h = lax.broadcasted_iota(jnp.int32, (T, H2), 1)
    hstates = jnp.zeros((T, H2), f32)            # row t = [h_fwd(t) | h_bwd(t)]

    for s in range(T):
        g = jnp.dot(h, whh, preferred_element_type=f32,
                    precision=_DEF) + proj[s:s + 1, :]                  # (1, 8H)
        sig = jax.nn.sigmoid(g[:, :6 * H])       # i_f,i_b,f_f,f_b,o_f,o_b
        gg = jnp.tanh(g[:, 6 * H:])              # g_f,g_b
        i_g = sig[:, :H2]
        f_g = sig[:, H2:2 * H2]
        o_g = sig[:, 2 * H2:3 * H2]
        c = f_g * c + i_g * gg
        h = o_g * jnp.tanh(c)
        # fwd half belongs to time s, bwd half to time T-1-s (off the chain)
        hstates = jnp.where(jnp.logical_and(sub_h == s, lane_h < H), h, hstates)
        hstates = jnp.where(jnp.logical_and(sub_h == T - 1 - s, lane_h >= H),
                            h, hstates)

    # ---- hidden2tag -----------------------------------------------------------
    wout = par_ref[WOUT_OFF:WOUT_OFF + H2, :][:, :K]                    # (2H, K)
    bout = par_ref[BOUT_ROW:BOUT_ROW + 1, :][:, :K]                     # (1, K)
    feats = jnp.dot(hstates, wout, preferred_element_type=f32,
                    precision=_HIGHEST) + bout                          # (T, K)

    # ---- Viterbi forward recursion (transposed transitions) ------------------
    transT = par_ref[TT_OFF:TT_OFF + K, :][:, :K]                       # (K, K)
    sub_kk = lax.broadcasted_iota(jnp.int32, (K, K), 0)
    sub_kk_f = sub_kk.astype(f32)
    eye = sub_kk == lax.broadcasted_iota(jnp.int32, (K, K), 1)
    col_k = lax.broadcasted_iota(jnp.int32, (K, 1), 0).astype(f32)

    fv = jnp.where(col_k == float(START), 0.0, NEG).astype(f32)         # (K, 1)
    bp_rows = []                                                        # register-resident
    for t in range(T):
        m = transT + fv                                                 # m[p, n]
        best = jnp.max(m, axis=0, keepdims=True)                        # (1, K)
        bp_rows.append(jnp.min(jnp.where(m == best, sub_kk_f, float(K)),
                               axis=0, keepdims=True))                  # first argmax
        new_row = best + feats[t:t + 1, :]                              # (1, K)
        fv = jnp.sum(jnp.where(eye, new_row, 0.0), axis=1, keepdims=True)

    terminal = fv + transT[:, STOP:STOP + 1]                            # (K, 1)
    best_sc = jnp.max(terminal, axis=0, keepdims=True)                  # (1, 1)
    best_idx = jnp.min(jnp.where(terminal == best_sc, col_k, float(K)),
                       axis=0, keepdims=True)                           # (1, 1)

    # ---- backpointer chase, assembled into ONE lane-dense output row ---------
    lane_out = lax.broadcasted_iota(jnp.int32, (1, 128), 1)
    lane_k = lax.broadcasted_iota(jnp.int32, (1, K), 1).astype(f32)
    out_row = jnp.where(lane_out == 0, best_sc, 0.0)                    # lane 0 = score
    cur = best_idx
    for s in range(T):
        t = T - 1 - s
        out_row = jnp.where(lane_out == t + 1, cur, out_row)            # lanes 1..T = path
        cur = jnp.sum(jnp.where(lane_k == cur, bp_rows[t], 0.0),
                      axis=1, keepdims=True)
    # `cur` now holds START (dropped), matching the torch backtrack.
    out_ref[0] = out_row


# --------------------------------- wrapper -----------------------------------
def bilstm_crf_forward(sentences, params_packed):
    """Batched BiLSTM_CRF.forward: per-sentence (path_score, best_path).

    sentences: (N, T) int32 token ids (each sentence decoded independently,
    batch_size=1 semantics per sentence).  Returns (scores (N,), paths (N, T)).
    """
    n_sent, seq = sentences.shape
    out = pl.pallas_call(
        _bilstm_crf_kernel,
        out_shape=jax.ShapeDtypeStruct((n_sent, 1, 128), jnp.float32),
        grid_spec=pltpu.PrefetchScalarGridSpec(
            num_scalar_prefetch=1,
            grid=(n_sent,),
            in_specs=[pl.BlockSpec((PAR_ROWS, 128), lambda n, ids: (0, 0))],
            out_specs=pl.BlockSpec((1, 1, 128), lambda n, ids: (n, 0, 0)),
        ),
        compiler_params=pltpu.CompilerParams(
            dimension_semantics=("parallel",)),
    )(sentences, params_packed)
    scores = out[:, 0, 0]
    paths = out[:, 0, 1:1 + seq].astype(jnp.int32)
    return scores, paths


# ---------------------------- parameter init ---------------------------------
def init_params(key):
    """PyTorch-layout parameters (LSTM gate order i,f,g,o)."""
    ks = jax.random.split(key, 14)

    def unif(k, shape, scale):
        return jax.random.uniform(k, shape, jnp.float32, -scale, scale)

    s = 1.0 / np.sqrt(H)
    embed = jax.random.normal(ks[0], (VOCAB, EMB), jnp.float32)

    w_ih_f = unif(ks[1], (4 * H, EMB), s); w_hh_f = unif(ks[2], (4 * H, H), s)
    b_ih_f = unif(ks[3], (4 * H,), s);     b_hh_f = unif(ks[4], (4 * H,), s)
    w_ih_b = unif(ks[5], (4 * H, EMB), s); w_hh_b = unif(ks[6], (4 * H, H), s)
    b_ih_b = unif(ks[7], (4 * H,), s);     b_hh_b = unif(ks[8], (4 * H,), s)

    wih = jnp.stack([w_ih_f.T, w_ih_b.T])                            # (2, E, 4H)
    whh = jnp.stack([w_hh_f.T, w_hh_b.T])                            # (2, H, 4H)
    b = jnp.stack([(b_ih_f + b_hh_f)[None, :],
                   (b_ih_b + b_hh_b)[None, :]])                      # (2, 1, 4H)

    s2 = 1.0 / np.sqrt(HID)
    w_out = unif(ks[9], (K, HID), s2)                                # hidden2tag
    b_out = unif(ks[10], (K,), s2)

    trans = jax.random.normal(ks[11], (K, K), jnp.float32)
    trans = trans.at[START, :].set(NEG)
    trans = trans.at[:, STOP].set(NEG)

    h0 = jax.random.normal(ks[12], (2, 1, H), jnp.float32)           # init_hidden()
    c0 = jax.random.normal(ks[13], (2, 1, H), jnp.float32)

    return dict(embed=embed, wih=wih, whh=whh, b=b, h0=h0, c0=c0,
                wout=w_out.T, bout=b_out[None, :], transitions=trans)


def pack_for_kernel(p):
    """Offline repack of ALL parameters into one lane-dense (PAR_ROWS, 128)
    f32 buffer: embed @ W_ih fused per direction into packed gate columns
    (i_f,i_b,f_f,f_b,o_f,o_b,g_f,g_b), block-diagonal W_hh, lane-padded
    hidden2tag / transitions / initial states."""
    embed = np.asarray(p["embed"], np.float32)
    wih = np.asarray(p["wih"], np.float32)
    whh = np.asarray(p["whh"], np.float32)
    b = np.asarray(p["b"], np.float32)
    h0 = np.asarray(p["h0"], np.float32)
    c0 = np.asarray(p["c0"], np.float32)
    wout = np.asarray(p["wout"], np.float32)          # (2H, K)
    bout = np.asarray(p["bout"], np.float32)          # (1, K)
    trans = np.asarray(p["transitions"], np.float32)  # (K, K)

    tslc = {"i": slice(0, H), "f": slice(H, 2 * H),
            "g": slice(2 * H, 3 * H), "o": slice(3 * H, 4 * H)}  # torch order

    def packed_cols(gate, d):
        base = {"i": 0, "f": 2 * H, "o": 4 * H, "g": 6 * H}[gate]
        return slice(base + d * H, base + (d + 1) * H)

    buf = np.zeros((PAR_ROWS, 128), np.float32)
    for d in range(2):                                 # 0 = fwd, 1 = bwd
        emb_proj = embed @ wih[d]                      # (V, 4H)
        for gate in ("i", "f", "o", "g"):
            buf[EP_OFF + d * VOCAB:EP_OFF + (d + 1) * VOCAB,
                packed_cols(gate, d)] = emb_proj[:, tslc[gate]]
            buf[WHH_OFF + d * H:WHH_OFF + (d + 1) * H,
                packed_cols(gate, d)] = whh[d][:, tslc[gate]]
            buf[B_ROW, packed_cols(gate, d)] = b[d][0, tslc[gate]]
    buf[H0_ROW, :2 * H] = np.concatenate([h0[0, 0], h0[1, 0]])
    buf[C0_ROW, :2 * H] = np.concatenate([c0[0, 0], c0[1, 0]])
    buf[BOUT_ROW, :K] = bout[0]
    buf[WOUT_OFF:WOUT_OFF + 2 * H, :K] = wout
    buf[TT_OFF:TT_OFF + K, :K] = trans.T
    return jnp.asarray(buf)


# ---------------------------- pure-numpy reference ----------------------------
def _sigmoid(x):
    return 1.0 / (1.0 + np.exp(-x))


def ref_lstm_feats(ids, p):
    embed = np.asarray(p["embed"], np.float64)
    wih = np.asarray(p["wih"], np.float64)
    whh = np.asarray(p["whh"], np.float64)
    b = np.asarray(p["b"], np.float64)
    h0 = np.asarray(p["h0"], np.float64)
    c0 = np.asarray(p["c0"], np.float64)
    wout = np.asarray(p["wout"], np.float64)
    bout = np.asarray(p["bout"], np.float64)
    emb = embed[np.asarray(ids)]                                     # (T, E)

    def cell(d, h, c, x):
        g = x @ wih[d] + h @ whh[d] + b[d]
        i = _sigmoid(g[:, :H]); f = _sigmoid(g[:, H:2 * H])
        gg = np.tanh(g[:, 2 * H:3 * H]); o = _sigmoid(g[:, 3 * H:])
        c = f * c + i * gg
        return o * np.tanh(c), c

    hs_f = np.zeros((T, H)); hs_b = np.zeros((T, H))
    h, c = h0[0], c0[0]
    for t in range(T):
        h, c = cell(0, h, c, emb[t:t + 1]); hs_f[t] = h[0]
    h, c = h0[1], c0[1]
    for t in range(T - 1, -1, -1):
        h, c = cell(1, h, c, emb[t:t + 1]); hs_b[t] = h[0]
    hcat = np.concatenate([hs_f, hs_b], axis=1)                      # (T, 2H)
    return hcat @ wout + bout                                        # (T, K)


def ref_viterbi(feats, trans):
    fv = np.full((K,), NEG, np.float64); fv[START] = 0.0
    f = np.asarray(feats, np.float64); tr = np.asarray(trans, np.float64)
    bps = []
    for t in range(T):
        m = tr + fv[None, :]                                         # m[next, prev]
        bp = np.argmax(m, axis=1)
        fv = m[np.arange(K), bp] + f[t]
        bps.append(bp)
    term = fv + tr[STOP]
    best = int(np.argmax(term))
    score = float(term[best])
    path = [best]
    for bp in reversed(bps):
        best = int(bp[best])
        path.append(best)
    start = path.pop()
    assert start == START
    path.reverse()
    return score, path


def ref_path_score(feats, trans, path):
    """CRF score of a given tag path (matches _score_sentence semantics)."""
    f = np.asarray(feats, np.float64); tr = np.asarray(trans, np.float64)
    s = tr[path[0], START] + f[0, path[0]]
    for t in range(1, T):
        s += tr[path[t], path[t - 1]] + f[t, path[t]]
    return float(s + tr[STOP, path[-1]])


# ---------------------------------- main --------------------------------------
if __name__ == "__main__":
    key = jax.random.PRNGKey(0)
    pkey, skey = jax.random.split(key)
    params = init_params(pkey)
    packed = pack_for_kernel(params)
    sentences = jax.random.randint(skey, (N_SENT, T), 0, VOCAB, dtype=jnp.int32)

    fwd = jax.jit(bilstm_crf_forward)
    scores, paths = fwd(sentences, packed)
    jax.block_until_ready((scores, paths))

    # correctness check against a pure-numpy reference of the module
    trans_np = np.asarray(params["transitions"])
    scores_np = np.asarray(scores)
    paths_np = np.asarray(paths)
    for i in range(N_SENT):
        feats = ref_lstm_feats(np.asarray(sentences[i]), params)
        ref_score, ref_path = ref_viterbi(feats, trans_np)
        k_path = [int(x) for x in paths_np[i]]
        assert all(0 <= v < K for v in k_path), k_path
        tol = 0.2 + 1e-3 * abs(ref_score)
        # best-path score must match the reference optimum
        assert abs(float(scores_np[i]) - ref_score) < tol, (
            float(scores_np[i]), ref_score)
        # decoded path must itself be (numerically) optimal under the reference
        assert abs(ref_path_score(feats, trans_np, k_path) - ref_score) < tol, (
            k_path, ref_path)

    print("KERNEL_OK")
</pallas_src>

<mosaic_0001>
module attributes {stable_mosaic.version = 11 : i64} {
  func.func @_bilstm_crf_kernel(%arg0: i32, %arg1: memref<4x8xi32, #tpu.memory_space<smem>>, %arg2: memref<184x128xf32, #tpu.memory_space<vmem>>, %arg3: memref<1x1x128xf32, #tpu.memory_space<vmem>>) attributes {dimension_semantics = [#tpu.dimension_semantics<parallel>], iteration_bounds = array<i64: 4>, scalar_prefetch = 1 : i64, scratch_operands = 0 : i64, tpu.core_type = #tpu.core_type<tc>, window_params = [{pipeline_mode = #tpu.pipeline_mode<synchronous>, transform_indices = @transform_0, window_bounds = array<i64: 184, 128>}, {transform_indices = @transform_1, window_bounds = array<i64: 1, 1, 128>}]} {
    %0 = tpu.iota {dimensions = array<i32: 1>} : vector<1x104xi32>
    %1 = tpu.iota {dimensions = array<i32: 0>} : vector<8x104xi32>
    %cst = arith.constant 0.000000e+00 : f32
    %2 = vector.broadcast %cst : f32 to vector<8x104xf32>
    %3 = arith.index_cast %arg0 : i32 to index
    %c0 = arith.constant 0 : index
    %4 = memref.load %arg1[%3, %c0] : memref<4x8xi32, #tpu.memory_space<smem>>
    %5 = arith.index_cast %arg0 : i32 to index
    %c7 = arith.constant 7 : index
    %6 = memref.load %arg1[%5, %c7] : memref<4x8xi32, #tpu.memory_space<smem>>
    %7 = vector.broadcast %4 : i32 to vector<1x104xi32>
    %8 = arith.cmpi eq, %0, %7 : vector<1x104xi32>
    %c50_i32 = arith.constant 50 : i32
    %9 = arith.addi %6, %c50_i32 : i32
    %10 = vector.broadcast %9 : i32 to vector<1x104xi32>
    %11 = arith.cmpi eq, %0, %10 : vector<1x104xi32>
    %12 = arith.ori %8, %11 : vector<1x104xi1>
    %c0_i32 = arith.constant 0 : i32
    %13 = vector.broadcast %c0_i32 : i32 to vector<8x104xi32>
    %14 = arith.cmpi eq, %1, %13 : vector<8x104xi32>
    %15 = vector.broadcast %12 : vector<1x104xi1> to vector<8x104xi1>
    %16 = arith.andi %14, %15 : vector<8x104xi1>
    %cst_0 = arith.constant 1.000000e+00 : f32
    %cst_1 = arith.constant 0.000000e+00 : f32
    %17 = vector.broadcast %cst_0 : f32 to vector<8x104xf32>
    %18 = vector.broadcast %cst_1 : f32 to vector<8x104xf32>
    %19 = arith.select %16, %17, %18 : vector<8x104xi1>, vector<8x104xf32>
    %20 = arith.addf %2, %19 : vector<8x104xf32>
    %21 = arith.index_cast %arg0 : i32 to index
    %c1 = arith.constant 1 : index
    %22 = memref.load %arg1[%21, %c1] : memref<4x8xi32, #tpu.memory_space<smem>>
    %23 = arith.index_cast %arg0 : i32 to index
    %c6 = arith.constant 6 : index
    %24 = memref.load %arg1[%23, %c6] : memref<4x8xi32, #tpu.memory_space<smem>>
    %25 = vector.broadcast %22 : i32 to vector<1x104xi32>
    %26 = arith.cmpi eq, %0, %25 : vector<1x104xi32>
    %c50_i32_2 = arith.constant 50 : i32
    %27 = arith.addi %24, %c50_i32_2 : i32
    %28 = vector.broadcast %27 : i32 to vector<1x104xi32>
    %29 = arith.cmpi eq, %0, %28 : vector<1x104xi32>
    %30 = arith.ori %26, %29 : vector<1x104xi1>
    %c1_i32 = arith.constant 1 : i32
    %31 = vector.broadcast %c1_i32 : i32 to vector<8x104xi32>
    %32 = arith.cmpi eq, %1, %31 : vector<8x104xi32>
    %33 = vector.broadcast %30 : vector<1x104xi1> to vector<8x104xi1>
    %34 = arith.andi %32, %33 : vector<8x104xi1>
    %cst_3 = arith.constant 1.000000e+00 : f32
    %cst_4 = arith.constant 0.000000e+00 : f32
    %35 = vector.broadcast %cst_3 : f32 to vector<8x104xf32>
    %36 = vector.broadcast %cst_4 : f32 to vector<8x104xf32>
    %37 = arith.select %34, %35, %36 : vector<8x104xi1>, vector<8x104xf32>
    %38 = arith.addf %20, %37 : vector<8x104xf32>
    %39 = arith.index_cast %arg0 : i32 to index
    %c2 = arith.constant 2 : index
    %40 = memref.load %arg1[%39, %c2] : memref<4x8xi32, #tpu.memory_space<smem>>
    %41 = arith.index_cast %arg0 : i32 to index
    %c5 = arith.constant 5 : index
    %42 = memref.load %arg1[%41, %c5] : memref<4x8xi32, #tpu.memory_space<smem>>
    %43 = vector.broadcast %40 : i32 to vector<1x104xi32>
    %44 = arith.cmpi eq, %0, %43 : vector<1x104xi32>
    %c50_i32_5 = arith.constant 50 : i32
    %45 = arith.addi %42, %c50_i32_5 : i32
    %46 = vector.broadcast %45 : i32 to vector<1x104xi32>
    %47 = arith.cmpi eq, %0, %46 : vector<1x104xi32>
    %48 = arith.ori %44, %47 : vector<1x104xi1>
    %c2_i32 = arith.constant 2 : i32
    %49 = vector.broadcast %c2_i32 : i32 to vector<8x104xi32>
    %50 = arith.cmpi eq, %1, %49 : vector<8x104xi32>
    %51 = vector.broadcast %48 : vector<1x104xi1> to vector<8x104xi1>
    %52 = arith.andi %50, %51 : vector<8x104xi1>
    %cst_6 = arith.constant 1.000000e+00 : f32
    %cst_7 = arith.constant 0.000000e+00 : f32
    %53 = vector.broadcast %cst_6 : f32 to vector<8x104xf32>
    %54 = vector.broadcast %cst_7 : f32 to vector<8x104xf32>
    %55 = arith.select %52, %53, %54 : vector<8x104xi1>, vector<8x104xf32>
    %56 = arith.addf %38, %55 : vector<8x104xf32>
    %57 = arith.index_cast %arg0 : i32 to index
    %c3 = arith.constant 3 : index
    %58 = memref.load %arg1[%57, %c3] : memref<4x8xi32, #tpu.memory_space<smem>>
    %59 = arith.index_cast %arg0 : i32 to index
    %c4 = arith.constant 4 : index
    %60 = memref.load %arg1[%59, %c4] : memref<4x8xi32, #tpu.memory_space<smem>>
    %61 = vector.broadcast %58 : i32 to vector<1x104xi32>
    %62 = arith.cmpi eq, %0, %61 : vector<1x104xi32>
    %c50_i32_8 = arith.constant 50 : i32
    %63 = arith.addi %60, %c50_i32_8 : i32
    %64 = vector.broadcast %63 : i32 to vector<1x104xi32>
    %65 = arith.cmpi eq, %0, %64 : vector<1x104xi32>
    %66 = arith.ori %62, %65 : vector<1x104xi1>
    %c3_i32 = arith.constant 3 : i32
    %67 = vector.broadcast %c3_i32 : i32 to vector<8x104xi32>
    %68 = arith.cmpi eq, %1, %67 : vector<8x104xi32>
    %69 = vector.broadcast %66 : vector<1x104xi1> to vector<8x104xi1>
    %70 = arith.andi %68, %69 : vector<8x104xi1>
    %cst_9 = arith.constant 1.000000e+00 : f32
    %cst_10 = arith.constant 0.000000e+00 : f32
    %71 = vector.broadcast %cst_9 : f32 to vector<8x104xf32>
    %72 = vector.broadcast %cst_10 : f32 to vector<8x104xf32>
    %73 = arith.select %70, %71, %72 : vector<8x104xi1>, vector<8x104xf32>
    %74 = arith.addf %56, %73 : vector<8x104xf32>
    %75 = arith.index_cast %arg0 : i32 to index
    %c4_11 = arith.constant 4 : index
    %76 = memref.load %arg1[%75, %c4_11] : memref<4x8xi32, #tpu.memory_space<smem>>
    %77 = arith.index_cast %arg0 : i32 to index
    %c3_12 = arith.constant 3 : index
    %78 = memref.load %arg1[%77, %c3_12] : memref<4x8xi32, #tpu.memory_space<smem>>
    %79 = vector.broadcast %76 : i32 to vector<1x104xi32>
    %80 = arith.cmpi eq, %0, %79 : vector<1x104xi32>
    %c50_i32_13 = arith.constant 50 : i32
    %81 = arith.addi %78, %c50_i32_13 : i32
    %82 = vector.broadcast %81 : i32 to vector<1x104xi32>
    %83 = arith.cmpi eq, %0, %82 : vector<1x104xi32>
    %84 = arith.ori %80, %83 : vector<1x104xi1>
    %c4_i32 = arith.constant 4 : i32
    %85 = vector.broadcast %c4_i32 : i32 to vector<8x104xi32>
    %86 = arith.cmpi eq, %1, %85 : vector<8x104xi32>
    %87 = vector.broadcast %84 : vector<1x104xi1> to vector<8x104xi1>
    %88 = arith.andi %86, %87 : vector<8x104xi1>
    %cst_14 = arith.constant 1.000000e+00 : f32
    %cst_15 = arith.constant 0.000000e+00 : f32
    %89 = vector.broadcast %cst_14 : f32 to vector<8x104xf32>
    %90 = vector.broadcast %cst_15 : f32 to vector<8x104xf32>
    %91 = arith.select %88, %89, %90 : vector<8x104xi1>, vector<8x104xf32>
    %92 = arith.addf %74, %91 : vector<8x104xf32>
    %93 = arith.index_cast %arg0 : i32 to index
    %c5_16 = arith.constant 5 : index
    %94 = memref.load %arg1[%93, %c5_16] : memref<4x8xi32, #tpu.memory_space<smem>>
    %95 = arith.index_cast %arg0 : i32 to index
    %c2_17 = arith.constant 2 : index
    %96 = memref.load %arg1[%95, %c2_17] : memref<4x8xi32, #tpu.memory_space<smem>>
    %97 = vector.broadcast %94 : i32 to vector<1x104xi32>
    %98 = arith.cmpi eq, %0, %97 : vector<1x104xi32>
    %c50_i32_18 = arith.constant 50 : i32
    %99 = arith.addi %96, %c50_i32_18 : i32
    %100 = vector.broadcast %99 : i32 to vector<1x104xi32>
    %101 = arith.cmpi eq, %0, %100 : vector<1x104xi32>
    %102 = arith.ori %98, %101 : vector<1x104xi1>
    %c5_i32 = arith.constant 5 : i32
    %103 = vector.broadcast %c5_i32 : i32 to vector<8x104xi32>
    %104 = arith.cmpi eq, %1, %103 : vector<8x104xi32>
    %105 = vector.broadcast %102 : vector<1x104xi1> to vector<8x104xi1>
    %106 = arith.andi %104, %105 : vector<8x104xi1>
    %cst_19 = arith.constant 1.000000e+00 : f32
    %cst_20 = arith.constant 0.000000e+00 : f32
    %107 = vector.broadcast %cst_19 : f32 to vector<8x104xf32>
    %108 = vector.broadcast %cst_20 : f32 to vector<8x104xf32>
    %109 = arith.select %106, %107, %108 : vector<8x104xi1>, vector<8x104xf32>
    %110 = arith.addf %92, %109 : vector<8x104xf32>
    %111 = arith.index_cast %arg0 : i32 to index
    %c6_21 = arith.constant 6 : index
    %112 = memref.load %arg1[%111, %c6_21] : memref<4x8xi32, #tpu.memory_space<smem>>
    %113 = arith.index_cast %arg0 : i32 to index
    %c1_22 = arith.constant 1 : index
    %114 = memref.load %arg1[%113, %c1_22] : memref<4x8xi32, #tpu.memory_space<smem>>
    %115 = vector.broadcast %112 : i32 to vector<1x104xi32>
    %116 = arith.cmpi eq, %0, %115 : vector<1x104xi32>
    %c50_i32_23 = arith.constant 50 : i32
    %117 = arith.addi %114, %c50_i32_23 : i32
    %118 = vector.broadcast %117 : i32 to vector<1x104xi32>
    %119 = arith.cmpi eq, %0, %118 : vector<1x104xi32>
    %120 = arith.ori %116, %119 : vector<1x104xi1>
    %c6_i32 = arith.constant 6 : i32
    %121 = vector.broadcast %c6_i32 : i32 to vector<8x104xi32>
    %122 = arith.cmpi eq, %1, %121 : vector<8x104xi32>
    %123 = vector.broadcast %120 : vector<1x104xi1> to vector<8x104xi1>
    %124 = arith.andi %122, %123 : vector<8x104xi1>
    %cst_24 = arith.constant 1.000000e+00 : f32
    %cst_25 = arith.constant 0.000000e+00 : f32
    %125 = vector.broadcast %cst_24 : f32 to vector<8x104xf32>
    %126 = vector.broadcast %cst_25 : f32 to vector<8x104xf32>
    %127 = arith.select %124, %125, %126 : vector<8x104xi1>, vector<8x104xf32>
    %128 = arith.addf %110, %127 : vector<8x104xf32>
    %129 = arith.index_cast %arg0 : i32 to index
    %c7_26 = arith.constant 7 : index
    %130 = memref.load %arg1[%129, %c7_26] : memref<4x8xi32, #tpu.memory_space<smem>>
    %131 = arith.index_cast %arg0 : i32 to index
    %c0_27 = arith.constant 0 : index
    %132 = memref.load %arg1[%131, %c0_27] : memref<4x8xi32, #tpu.memory_space<smem>>
    %133 = vector.broadcast %130 : i32 to vector<1x104xi32>
    %134 = arith.cmpi eq, %0, %133 : vector<1x104xi32>
    %c50_i32_28 = arith.constant 50 : i32
    %135 = arith.addi %132, %c50_i32_28 : i32
    %136 = vector.broadcast %135 : i32 to vector<1x104xi32>
    %137 = arith.cmpi eq, %0, %136 : vector<1x104xi32>
    %138 = arith.ori %134, %137 : vector<1x104xi1>
    %c7_i32 = arith.constant 7 : i32
    %139 = vector.broadcast %c7_i32 : i32 to vector<8x104xi32>
    %140 = arith.cmpi eq, %1, %139 : vector<8x104xi32>
    %141 = vector.broadcast %138 : vector<1x104xi1> to vector<8x104xi1>
    %142 = arith.andi %140, %141 : vector<8x104xi1>
    %cst_29 = arith.constant 1.000000e+00 : f32
    %cst_30 = arith.constant 0.000000e+00 : f32
    %143 = vector.broadcast %cst_29 : f32 to vector<8x104xf32>
    %144 = vector.broadcast %cst_30 : f32 to vector<8x104xf32>
    %145 = arith.select %142, %143, %144 : vector<8x104xi1>, vector<8x104xf32>
    %146 = arith.addf %128, %145 : vector<8x104xf32>
    %c0_31 = arith.constant 0 : index
    %c0_32 = arith.constant 0 : index
    %147 = vector.load %arg2[%c0_31, %c0_32] : memref<184x128xf32, #tpu.memory_space<vmem>>, vector<104x128xf32>
    %c136 = arith.constant 136 : index
    %c0_33 = arith.constant 0 : index
    %148 = vector.load %arg2[%c136, %c0_33] : memref<184x128xf32, #tpu.memory_space<vmem>>, vector<1x128xf32>
    %cst_34 = arith.constant dense<0.000000e+00> : vector<8x128xf32>
    %149 = tpu.matmul %146, %147, %cst_34 {dimension_numbers = #tpu.dot_dimension_numbers<[1], [0], [0], [1], [0, 0, 1, 1], [], []>, precision = #tpu.contract_precision<fp32>} : vector<8x104xf32>, vector<104x128xf32>, vector<8x128xf32> -> vector<8x128xf32>
    %150 = vector.broadcast %148 : vector<1x128xf32> to vector<8x128xf32>
    %151 = arith.addf %149, %150 : vector<8x128xf32>
    %c104 = arith.constant 104 : index
    %c0_35 = arith.constant 0 : index
    %152 = vector.load %arg2[%c104, %c0_35] : memref<184x128xf32, #tpu.memory_space<vmem>>, vector<32x128xf32>
    %c137 = arith.constant 137 : index
    %c0_36 = arith.constant 0 : index
    %153 = vector.load %arg2[%c137, %c0_36] : memref<184x128xf32, #tpu.memory_space<vmem>>, vector<1x128xf32>
    %154 = vector.extract_strided_slice %153 {offsets = [0, 0], sizes = [1, 32], strides = [1, 1]} : vector<1x128xf32> to vector<1x32xf32>
    %c138 = arith.constant 138 : index
    %c0_37 = arith.constant 0 : index
    %155 = vector.load %arg2[%c138, %c0_37] : memref<184x128xf32, #tpu.memory_space<vmem>>, vector<1x128xf32>
    %156 = vector.extract_strided_slice %155 {offsets = [0, 0], sizes = [1, 32], strides = [1, 1]} : vector<1x128xf32> to vector<1x32xf32>
    %157 = tpu.iota {dimensions = array<i32: 0>} : vector<8x32xi32>
    %158 = tpu.iota {dimensions = array<i32: 1>} : vector<8x32xi32>
    %cst_38 = arith.constant 0.000000e+00 : f32
    %159 = vector.broadcast %cst_38 : f32 to vector<8x32xf32>
    %cst_39 = arith.constant dense<0.000000e+00> : vector<1x128xf32>
    %160 = tpu.matmul %154, %152, %cst_39 {dimension_numbers = #tpu.dot_dimension_numbers<[1], [0], [0], [1], [0, 0, 1, 1], [], []>} : vector<1x32xf32>, vector<32x128xf32>, vector<1x128xf32> -> vector<1x128xf32>
    %161 = vector.extract_strided_slice %151 {offsets = [0, 0], sizes = [1, 128], strides = [1, 1]} : vector<8x128xf32> to vector<1x128xf32>
    %162 = arith.addf %160, %161 : vector<1x128xf32>
    %163 = vector.extract_strided_slice %162 {offsets = [0, 0], sizes = [1, 96], strides = [1, 1]} : vector<1x128xf32> to vector<1x96xf32>
    %164 = arith.negf %163 : vector<1x96xf32>
    %165 = math.exp %164 : vector<1x96xf32>
    %cst_40 = arith.constant 1.000000e+00 : f32
    %166 = vector.broadcast %cst_40 : f32 to vector<1x96xf32>
    %167 = arith.addf %166, %165 : vector<1x96xf32>
    %168 = arith.divf %166, %167 : vector<1x96xf32>
    %169 = vector.extract_strided_slice %162 {offsets = [0, 96], sizes = [1, 32], strides = [1, 1]} : vector<1x128xf32> to vector<1x32xf32>
    %170 = math.tanh %169 : vector<1x32xf32>
    %171 = vector.extract_strided_slice %168 {offsets = [0, 0], sizes = [1, 32], strides = [1, 1]} : vector<1x96xf32> to vector<1x32xf32>
    %172 = vector.extract_strided_slice %168 {offsets = [0, 32], sizes = [1, 32], strides = [1, 1]} : vector<1x96xf32> to vector<1x32xf32>
    %173 = vector.extract_strided_slice %168 {offsets = [0, 64], sizes = [1, 32], strides = [1, 1]} : vector<1x96xf32> to vector<1x32xf32>
    %174 = arith.mulf %172, %156 : vector<1x32xf32>
    %175 = arith.mulf %171, %170 : vector<1x32xf32>
    %176 = arith.addf %174, %175 : vector<1x32xf32>
    %177 = math.tanh %176 : vector<1x32xf32>
    %178 = arith.mulf %173, %177 : vector<1x32xf32>
    %c0_i32_41 = arith.constant 0 : i32
    %179 = vector.broadcast %c0_i32_41 : i32 to vector<8x32xi32>
    %180 = arith.cmpi eq, %157, %179 : vector<8x32xi32>
    %c16_i32 = arith.constant 16 : i32
    %181 = vector.broadcast %c16_i32 : i32 to vector<8x32xi32>
    %182 = arith.cmpi slt, %158, %181 : vector<8x32xi32>
    %183 = arith.andi %180, %182 : vector<8x32xi1>
    %184 = vector.shape_cast %178 : vector<1x32xf32> to vector<1x32xf32>
    %185 = vector.broadcast %184 : vector<1x32xf32> to vector<8x32xf32>
    %186 = arith.select %183, %185, %159 : vector<8x32xi1>, vector<8x32xf32>
    %c7_i32_42 = arith.constant 7 : i32
    %187 = vector.broadcast %c7_i32_42 : i32 to vector<8x32xi32>
    %188 = arith.cmpi eq, %157, %187 : vector<8x32xi32>
    %c16_i32_43 = arith.constant 16 : i32
    %189 = vector.broadcast %c16_i32_43 : i32 to vector<8x32xi32>
    %190 = arith.cmpi sge, %158, %189 : vector<8x32xi32>
    %191 = arith.andi %188, %190 : vector<8x32xi1>
    %192 = vector.shape_cast %178 : vector<1x32xf32> to vector<1x32xf32>
    %193 = vector.broadcast %192 : vector<1x32xf32> to vector<8x32xf32>
    %194 = arith.select %191, %193, %186 : vector<8x32xi1>, vector<8x32xf32>
    %cst_44 = arith.constant dense<0.000000e+00> : vector<1x128xf32>
    %195 = tpu.matmul %178, %152, %cst_44 {dimension_numbers = #tpu.dot_dimension_numbers<[1], [0], [0], [1], [0, 0, 1, 1], [], []>} : vector<1x32xf32>, vector<32x128xf32>, vector<1x128xf32> -> vector<1x128xf32>
    %196 = vector.extract_strided_slice %151 {offsets = [1, 0], sizes = [1, 128], strides = [1, 1]} : vector<8x128xf32> to vector<1x128xf32>
    %197 = arith.addf %195, %196 : vector<1x128xf32>
    %198 = vector.extract_strided_slice %197 {offsets = [0, 0], sizes = [1, 96], strides = [1, 1]} : vector<1x128xf32> to vector<1x96xf32>
    %199 = arith.negf %198 : vector<1x96xf32>
    %200 = math.exp %199 : vector<1x96xf32>
    %cst_45 = arith.constant 1.000000e+00 : f32
    %201 = vector.broadcast %cst_45 : f32 to vector<1x96xf32>
    %202 = arith.addf %201, %200 : vector<1x96xf32>
    %203 = arith.divf %201, %202 : vector<1x96xf32>
    %204 = vector.extract_strided_slice %197 {offsets = [0, 96], sizes = [1, 32], strides = [1, 1]} : vector<1x128xf32> to vector<1x32xf32>
    %205 = math.tanh %204 : vector<1x32xf32>
    %206 = vector.extract_strided_slice %203 {offsets = [0, 0], sizes = [1, 32], strides = [1, 1]} : vector<1x96xf32> to vector<1x32xf32>
    %207 = vector.extract_strided_slice %203 {offsets = [0, 32], sizes = [1, 32], strides = [1, 1]} : vector<1x96xf32> to vector<1x32xf32>
    %208 = vector.extract_strided_slice %203 {offsets = [0, 64], sizes = [1, 32], strides = [1, 1]} : vector<1x96xf32> to vector<1x32xf32>
    %209 = arith.mulf %207, %176 : vector<1x32xf32>
    %210 = arith.mulf %206, %205 : vector<1x32xf32>
    %211 = arith.addf %209, %210 : vector<1x32xf32>
    %212 = math.tanh %211 : vector<1x32xf32>
    %213 = arith.mulf %208, %212 : vector<1x32xf32>
    %c1_i32_46 = arith.constant 1 : i32
    %214 = vector.broadcast %c1_i32_46 : i32 to vector<8x32xi32>
    %215 = arith.cmpi eq, %157, %214 : vector<8x32xi32>
    %c16_i32_47 = arith.constant 16 : i32
    %216 = vector.broadcast %c16_i32_47 : i32 to vector<8x32xi32>
    %217 = arith.cmpi slt, %158, %216 : vector<8x32xi32>
    %218 = arith.andi %215, %217 : vector<8x32xi1>
    %219 = vector.shape_cast %213 : vector<1x32xf32> to vector<1x32xf32>
    %220 = vector.broadcast %219 : vector<1x32xf32> to vector<8x32xf32>
    %221 = arith.select %218, %220, %194 : vector<8x32xi1>, vector<8x32xf32>
    %c6_i32_48 = arith.constant 6 : i32
    %222 = vector.broadcast %c6_i32_48 : i32 to vector<8x32xi32>
    %223 = arith.cmpi eq, %157, %222 : vector<8x32xi32>
    %c16_i32_49 = arith.constant 16 : i32
    %224 = vector.broadcast %c16_i32_49 : i32 to vector<8x32xi32>
    %225 = arith.cmpi sge, %158, %224 : vector<8x32xi32>
    %226 = arith.andi %223, %225 : vector<8x32xi1>
    %227 = vector.shape_cast %213 : vector<1x32xf32> to vector<1x32xf32>
    %228 = vector.broadcast %227 : vector<1x32xf32> to vector<8x32xf32>
    %229 = arith.select %226, %228, %221 : vector<8x32xi1>, vector<8x32xf32>
    %cst_50 = arith.constant dense<0.000000e+00> : vector<1x128xf32>
    %230 = tpu.matmul %213, %152, %cst_50 {dimension_numbers = #tpu.dot_dimension_numbers<[1], [0], [0], [1], [0, 0, 1, 1], [], []>} : vector<1x32xf32>, vector<32x128xf32>, vector<1x128xf32> -> vector<1x128xf32>
    %231 = vector.extract_strided_slice %151 {offsets = [2, 0], sizes = [1, 128], strides = [1, 1]} : vector<8x128xf32> to vector<1x128xf32>
    %232 = arith.addf %230, %231 : vector<1x128xf32>
    %233 = vector.extract_strided_slice %232 {offsets = [0, 0], sizes = [1, 96], strides = [1, 1]} : vector<1x128xf32> to vector<1x96xf32>
    %234 = arith.negf %233 : vector<1x96xf32>
    %235 = math.exp %234 : vector<1x96xf32>
    %cst_51 = arith.constant 1.000000e+00 : f32
    %236 = vector.broadcast %cst_51 : f32 to vector<1x96xf32>
    %237 = arith.addf %236, %235 : vector<1x96xf32>
    %238 = arith.divf %236, %237 : vector<1x96xf32>
    %239 = vector.extract_strided_slice %232 {offsets = [0, 96], sizes = [1, 32], strides = [1, 1]} : vector<1x128xf32> to vector<1x32xf32>
    %240 = math.tanh %239 : vector<1x32xf32>
    %241 = vector.extract_strided_slice %238 {offsets = [0, 0], sizes = [1, 32], strides = [1, 1]} : vector<1x96xf32> to vector<1x32xf32>
    %242 = vector.extract_strided_slice %238 {offsets = [0, 32], sizes = [1, 32], strides = [1, 1]} : vector<1x96xf32> to vector<1x32xf32>
    %243 = vector.extract_strided_slice %238 {offsets = [0, 64], sizes = [1, 32], strides = [1, 1]} : vector<1x96xf32> to vector<1x32xf32>
    %244 = arith.mulf %242, %211 : vector<1x32xf32>
    %245 = arith.mulf %241, %240 : vector<1x32xf32>
    %246 = arith.addf %244, %245 : vector<1x32xf32>
    %247 = math.tanh %246 : vector<1x32xf32>
    %248 = arith.mulf %243, %247 : vector<1x32xf32>
    %c2_i32_52 = arith.constant 2 : i32
    %249 = vector.broadcast %c2_i32_52 : i32 to vector<8x32xi32>
    %250 = arith.cmpi eq, %157, %249 : vector<8x32xi32>
    %c16_i32_53 = arith.constant 16 : i32
    %251 = vector.broadcast %c16_i32_53 : i32 to vector<8x32xi32>
    %252 = arith.cmpi slt, %158, %251 : vector<8x32xi32>
    %253 = arith.andi %250, %252 : vector<8x32xi1>
    %254 = vector.shape_cast %248 : vector<1x32xf32> to vector<1x32xf32>
    %255 = vector.broadcast %254 : vector<1x32xf32> to vector<8x32xf32>
    %256 = arith.select %253, %255, %229 : vector<8x32xi1>, vector<8x32xf32>
    %c5_i32_54 = arith.constant 5 : i32
    %257 = vector.broadcast %c5_i32_54 : i32 to vector<8x32xi32>
    %258 = arith.cmpi eq, %157, %257 : vector<8x32xi32>
    %c16_i32_55 = arith.constant 16 : i32
    %259 = vector.broadcast %c16_i32_55 : i32 to vector<8x32xi32>
    %260 = arith.cmpi sge, %158, %259 : vector<8x32xi32>
    %261 = arith.andi %258, %260 : vector<8x32xi1>
    %262 = vector.shape_cast %248 : vector<1x32xf32> to vector<1x32xf32>
    %263 = vector.broadcast %262 : vector<1x32xf32> to vector<8x32xf32>
    %264 = arith.select %261, %263, %256 : vector<8x32xi1>, vector<8x32xf32>
    %cst_56 = arith.constant dense<0.000000e+00> : vector<1x128xf32>
    %265 = tpu.matmul %248, %152, %cst_56 {dimension_numbers = #tpu.dot_dimension_numbers<[1], [0], [0], [1], [0, 0, 1, 1], [], []>} : vector<1x32xf32>, vector<32x128xf32>, vector<1x128xf32> -> vector<1x128xf32>
    %266 = vector.extract_strided_slice %151 {offsets = [3, 0], sizes = [1, 128], strides = [1, 1]} : vector<8x128xf32> to vector<1x128xf32>
    %267 = arith.addf %265, %266 : vector<1x128xf32>
    %268 = vector.extract_strided_slice %267 {offsets = [0, 0], sizes = [1, 96], strides = [1, 1]} : vector<1x128xf32> to vector<1x96xf32>
    %269 = arith.negf %268 : vector<1x96xf32>
    %270 = math.exp %269 : vector<1x96xf32>
    %cst_57 = arith.constant 1.000000e+00 : f32
    %271 = vector.broadcast %cst_57 : f32 to vector<1x96xf32>
    %272 = arith.addf %271, %270 : vector<1x96xf32>
    %273 = arith.divf %271, %272 : vector<1x96xf32>
    %274 = vector.extract_strided_slice %267 {offsets = [0, 96], sizes = [1, 32], strides = [1, 1]} : vector<1x128xf32> to vector<1x32xf32>
    %275 = math.tanh %274 : vector<1x32xf32>
    %276 = vector.extract_strided_slice %273 {offsets = [0, 0], sizes = [1, 32], strides = [1, 1]} : vector<1x96xf32> to vector<1x32xf32>
    %277 = vector.extract_strided_slice %273 {offsets = [0, 32], sizes = [1, 32], strides = [1, 1]} : vector<1x96xf32> to vector<1x32xf32>
    %278 = vector.extract_strided_slice %273 {offsets = [0, 64], sizes = [1, 32], strides = [1, 1]} : vector<1x96xf32> to vector<1x32xf32>
    %279 = arith.mulf %277, %246 : vector<1x32xf32>
    %280 = arith.mulf %276, %275 : vector<1x32xf32>
    %281 = arith.addf %279, %280 : vector<1x32xf32>
    %282 = math.tanh %281 : vector<1x32xf32>
    %283 = arith.mulf %278, %282 : vector<1x32xf32>
    %c3_i32_58 = arith.constant 3 : i32
    %284 = vector.broadcast %c3_i32_58 : i32 to vector<8x32xi32>
    %285 = arith.cmpi eq, %157, %284 : vector<8x32xi32>
    %c16_i32_59 = arith.constant 16 : i32
    %286 = vector.broadcast %c16_i32_59 : i32 to vector<8x32xi32>
    %287 = arith.cmpi slt, %158, %286 : vector<8x32xi32>
    %288 = arith.andi %285, %287 : vector<8x32xi1>
    %289 = vector.shape_cast %283 : vector<1x32xf32> to vector<1x32xf32>
    %290 = vector.broadcast %289 : vector<1x32xf32> to vector<8x32xf32>
    %291 = arith.select %288, %290, %264 : vector<8x32xi1>, vector<8x32xf32>
    %c4_i32_60 = arith.constant 4 : i32
    %292 = vector.broadcast %c4_i32_60 : i32 to vector<8x32xi32>
    %293 = arith.cmpi eq, %157, %292 : vector<8x32xi32>
    %c16_i32_61 = arith.constant 16 : i32
    %294 = vector.broadcast %c16_i32_61 : i32 to vector<8x32xi32>
    %295 = arith.cmpi sge, %158, %294 : vector<8x32xi32>
    %296 = arith.andi %293, %295 : vector<8x32xi1>
    %297 = vector.shape_cast %283 : vector<1x32xf32> to vector<1x32xf32>
    %298 = vector.broadcast %297 : vector<1x32xf32> to vector<8x32xf32>
    %299 = arith.select %296, %298, %291 : vector<8x32xi1>, vector<8x32xf32>
    %cst_62 = arith.constant dense<0.000000e+00> : vector<1x128xf32>
    %300 = tpu.matmul %283, %152, %cst_62 {dimension_numbers = #tpu.dot_dimension_numbers<[1], [0], [0], [1], [0, 0, 1, 1], [], []>} : vector<1x32xf32>, vector<32x128xf32>, vector<1x128xf32> -> vector<1x128xf32>
    %301 = vector.extract_strided_slice %151 {offsets = [4, 0], sizes = [1, 128], strides = [1, 1]} : vector<8x128xf32> to vector<1x128xf32>
    %302 = arith.addf %300, %301 : vector<1x128xf32>
    %303 = vector.extract_strided_slice %302 {offsets = [0, 0], sizes = [1, 96], strides = [1, 1]} : vector<1x128xf32> to vector<1x96xf32>
    %304 = arith.negf %303 : vector<1x96xf32>
    %305 = math.exp %304 : vector<1x96xf32>
    %cst_63 = arith.constant 1.000000e+00 : f32
    %306 = vector.broadcast %cst_63 : f32 to vector<1x96xf32>
    %307 = arith.addf %306, %305 : vector<1x96xf32>
    %308 = arith.divf %306, %307 : vector<1x96xf32>
    %309 = vector.extract_strided_slice %302 {offsets = [0, 96], sizes = [1, 32], strides = [1, 1]} : vector<1x128xf32> to vector<1x32xf32>
    %310 = math.tanh %309 : vector<1x32xf32>
    %311 = vector.extract_strided_slice %308 {offsets = [0, 0], sizes = [1, 32], strides = [1, 1]} : vector<1x96xf32> to vector<1x32xf32>
    %312 = vector.extract_strided_slice %308 {offsets = [0, 32], sizes = [1, 32], strides = [1, 1]} : vector<1x96xf32> to vector<1x32xf32>
    %313 = vector.extract_strided_slice %308 {offsets = [0, 64], sizes = [1, 32], strides = [1, 1]} : vector<1x96xf32> to vector<1x32xf32>
    %314 = arith.mulf %312, %281 : vector<1x32xf32>
    %315 = arith.mulf %311, %310 : vector<1x32xf32>
    %316 = arith.addf %314, %315 : vector<1x32xf32>
    %317 = math.tanh %316 : vector<1x32xf32>
    %318 = arith.mulf %313, %317 : vector<1x32xf32>
    %c4_i32_64 = arith.constant 4 : i32
    %319 = vector.broadcast %c4_i32_64 : i32 to vector<8x32xi32>
    %320 = arith.cmpi eq, %157, %319 : vector<8x32xi32>
    %c16_i32_65 = arith.constant 16 : i32
    %321 = vector.broadcast %c16_i32_65 : i32 to vector<8x32xi32>
    %322 = arith.cmpi slt, %158, %321 : vector<8x32xi32>
    %323 = arith.andi %320, %322 : vector<8x32xi1>
    %324 = vector.shape_cast %318 : vector<1x32xf32> to vector<1x32xf32>
    %325 = vector.broadcast %324 : vector<1x32xf32> to vector<8x32xf32>
    %326 = arith.select %323, %325, %299 : vector<8x32xi1>, vector<8x32xf32>
    %c3_i32_66 = arith.constant 3 : i32
    %327 = vector.broadcast %c3_i32_66 : i32 to vector<8x32xi32>
    %328 = arith.cmpi eq, %157, %327 : vector<8x32xi32>
    %c16_i32_67 = arith.constant 16 : i32
    %329 = vector.broadcast %c16_i32_67 : i32 to vector<8x32xi32>
    %330 = arith.cmpi sge, %158, %329 : vector<8x32xi32>
    %331 = arith.andi %328, %330 : vector<8x32xi1>
    %332 = vector.shape_cast %318 : vector<1x32xf32> to vector<1x32xf32>
    %333 = vector.broadcast %332 : vector<1x32xf32> to vector<8x32xf32>
    %334 = arith.select %331, %333, %326 : vector<8x32xi1>, vector<8x32xf32>
    %cst_68 = arith.constant dense<0.000000e+00> : vector<1x128xf32>
    %335 = tpu.matmul %318, %152, %cst_68 {dimension_numbers = #tpu.dot_dimension_numbers<[1], [0], [0], [1], [0, 0, 1, 1], [], []>} : vector<1x32xf32>, vector<32x128xf32>, vector<1x128xf32> -> vector<1x128xf32>
    %336 = vector.extract_strided_slice %151 {offsets = [5, 0], sizes = [1, 128], strides = [1, 1]} : vector<8x128xf32> to vector<1x128xf32>
    %337 = arith.addf %335, %336 : vector<1x128xf32>
    %338 = vector.extract_strided_slice %337 {offsets = [0, 0], sizes = [1, 96], strides = [1, 1]} : vector<1x128xf32> to vector<1x96xf32>
    %339 = arith.negf %338 : vector<1x96xf32>
    %340 = math.exp %339 : vector<1x96xf32>
    %cst_69 = arith.constant 1.000000e+00 : f32
    %341 = vector.broadcast %cst_69 : f32 to vector<1x96xf32>
    %342 = arith.addf %341, %340 : vector<1x96xf32>
    %343 = arith.divf %341, %342 : vector<1x96xf32>
    %344 = vector.extract_strided_slice %337 {offsets = [0, 96], sizes = [1, 32], strides = [1, 1]} : vector<1x128xf32> to vector<1x32xf32>
    %345 = math.tanh %344 : vector<1x32xf32>
    %346 = vector.extract_strided_slice %343 {offsets = [0, 0], sizes = [1, 32], strides = [1, 1]} : vector<1x96xf32> to vector<1x32xf32>
    %347 = vector.extract_strided_slice %343 {offsets = [0, 32], sizes = [1, 32], strides = [1, 1]} : vector<1x96xf32> to vector<1x32xf32>
    %348 = vector.extract_strided_slice %343 {offsets = [0, 64], sizes = [1, 32], strides = [1, 1]} : vector<1x96xf32> to vector<1x32xf32>
    %349 = arith.mulf %347, %316 : vector<1x32xf32>
    %350 = arith.mulf %346, %345 : vector<1x32xf32>
    %351 = arith.addf %349, %350 : vector<1x32xf32>
    %352 = math.tanh %351 : vector<1x32xf32>
    %353 = arith.mulf %348, %352 : vector<1x32xf32>
    %c5_i32_70 = arith.constant 5 : i32
    %354 = vector.broadcast %c5_i32_70 : i32 to vector<8x32xi32>
    %355 = arith.cmpi eq, %157, %354 : vector<8x32xi32>
    %c16_i32_71 = arith.constant 16 : i32
    %356 = vector.broadcast %c16_i32_71 : i32 to vector<8x32xi32>
    %357 = arith.cmpi slt, %158, %356 : vector<8x32xi32>
    %358 = arith.andi %355, %357 : vector<8x32xi1>
    %359 = vector.shape_cast %353 : vector<1x32xf32> to vector<1x32xf32>
    %360 = vector.broadcast %359 : vector<1x32xf32> to vector<8x32xf32>
    %361 = arith.select %358, %360, %334 : vector<8x32xi1>, vector<8x32xf32>
    %c2_i32_72 = arith.constant 2 : i32
    %362 = vector.broadcast %c2_i32_72 : i32 to vector<8x32xi32>
    %363 = arith.cmpi eq, %157, %362 : vector<8x32xi32>
    %c16_i32_73 = arith.constant 16 : i32
    %364 = vector.broadcast %c16_i32_73 : i32 to vector<8x32xi32>
    %365 = arith.cmpi sge, %158, %364 : vector<8x32xi32>
    %366 = arith.andi %363, %365 : vector<8x32xi1>
    %367 = vector.shape_cast %353 : vector<1x32xf32> to vector<1x32xf32>
    %368 = vector.broadcast %367 : vector<1x32xf32> to vector<8x32xf32>
    %369 = arith.select %366, %368, %361 : vector<8x32xi1>, vector<8x32xf32>
    %cst_74 = arith.constant dense<0.000000e+00> : vector<1x128xf32>
    %370 = tpu.matmul %353, %152, %cst_74 {dimension_numbers = #tpu.dot_dimension_numbers<[1], [0], [0], [1], [0, 0, 1, 1], [], []>} : vector<1x32xf32>, vector<32x128xf32>, vector<1x128xf32> -> vector<1x128xf32>
    %371 = vector.extract_strided_slice %151 {offsets = [6, 0], sizes = [1, 128], strides = [1, 1]} : vector<8x128xf32> to vector<1x128xf32>
    %372 = arith.addf %370, %371 : vector<1x128xf32>
    %373 = vector.extract_strided_slice %372 {offsets = [0, 0], sizes = [1, 96], strides = [1, 1]} : vector<1x128xf32> to vector<1x96xf32>
    %374 = arith.negf %373 : vector<1x96xf32>
    %375 = math.exp %374 : vector<1x96xf32>
    %cst_75 = arith.constant 1.000000e+00 : f32
    %376 = vector.broadcast %cst_75 : f32 to vector<1x96xf32>
    %377 = arith.addf %376, %375 : vector<1x96xf32>
    %378 = arith.divf %376, %377 : vector<1x96xf32>
    %379 = vector.extract_strided_slice %372 {offsets = [0, 96], sizes = [1, 32], strides = [1, 1]} : vector<1x128xf32> to vector<1x32xf32>
    %380 = math.tanh %379 : vector<1x32xf32>
    %381 = vector.extract_strided_slice %378 {offsets = [0, 0], sizes = [1, 32], strides = [1, 1]} : vector<1x96xf32> to vector<1x32xf32>
    %382 = vector.extract_strided_slice %378 {offsets = [0, 32], sizes = [1, 32], strides = [1, 1]} : vector<1x96xf32> to vector<1x32xf32>
    %383 = vector.extract_strided_slice %378 {offsets = [0, 64], sizes = [1, 32], strides = [1, 1]} : vector<1x96xf32> to vector<1x32xf32>
    %384 = arith.mulf %382, %351 : vector<1x32xf32>
    %385 = arith.mulf %381, %380 : vector<1x32xf32>
    %386 = arith.addf %384, %385 : vector<1x32xf32>
    %387 = math.tanh %386 : vector<1x32xf32>
    %388 = arith.mulf %383, %387 : vector<1x32xf32>
    %c6_i32_76 = arith.constant 6 : i32
    %389 = vector.broadcast %c6_i32_76 : i32 to vector<8x32xi32>
    %390 = arith.cmpi eq, %157, %389 : vector<8x32xi32>
    %c16_i32_77 = arith.constant 16 : i32
    %391 = vector.broadcast %c16_i32_77 : i32 to vector<8x32xi32>
    %392 = arith.cmpi slt, %158, %391 : vector<8x32xi32>
    %393 = arith.andi %390, %392 : vector<8x32xi1>
    %394 = vector.shape_cast %388 : vector<1x32xf32> to vector<1x32xf32>
    %395 = vector.broadcast %394 : vector<1x32xf32> to vector<8x32xf32>
    %396 = arith.select %393, %395, %369 : vector<8x32xi1>, vector<8x32xf32>
    %c1_i32_78 = arith.constant 1 : i32
    %397 = vector.broadcast %c1_i32_78 : i32 to vector<8x32xi32>
    %398 = arith.cmpi eq, %157, %397 : vector<8x32xi32>
    %c16_i32_79 = arith.constant 16 : i32
    %399 = vector.broadcast %c16_i32_79 : i32 to vector<8x32xi32>
    %400 = arith.cmpi sge, %158, %399 : vector<8x32xi32>
    %401 = arith.andi %398, %400 : vector<8x32xi1>
    %402 = vector.shape_cast %388 : vector<1x32xf32> to vector<1x32xf32>
    %403 = vector.broadcast %402 : vector<1x32xf32> to vector<8x32xf32>
    %404 = arith.select %401, %403, %396 : vector<8x32xi1>, vector<8x32xf32>
    %cst_80 = arith.constant dense<0.000000e+00> : vector<1x128xf32>
    %405 = tpu.matmul %388, %152, %cst_80 {dimension_numbers = #tpu.dot_dimension_numbers<[1], [0], [0], [1], [0, 0, 1, 1], [], []>} : vector<1x32xf32>, vector<32x128xf32>, vector<1x128xf32> -> vector<1x128xf32>
    %406 = vector.extract_strided_slice %151 {offsets = [7, 0], sizes = [1, 128], strides = [1, 1]} : vector<8x128xf32> to vector<1x128xf32>
    %407 = arith.addf %405, %406 : vector<1x128xf32>
    %408 = vector.extract_strided_slice %407 {offsets = [0, 0], sizes = [1, 96], strides = [1, 1]} : vector<1x128xf32> to vector<1x96xf32>
    %409 = arith.negf %408 : vector<1x96xf32>
    %410 = math.exp %409 : vector<1x96xf32>
    %cst_81 = arith.constant 1.000000e+00 : f32
    %411 = vector.broadcast %cst_81 : f32 to vector<1x96xf32>
    %412 = arith.addf %411, %410 : vector<1x96xf32>
    %413 = arith.divf %411, %412 : vector<1x96xf32>
    %414 = vector.extract_strided_slice %407 {offsets = [0, 96], sizes = [1, 32], strides = [1, 1]} : vector<1x128xf32> to vector<1x32xf32>
    %415 = math.tanh %414 : vector<1x32xf32>
    %416 = vector.extract_strided_slice %413 {offsets = [0, 0], sizes = [1, 32], strides = [1, 1]} : vector<1x96xf32> to vector<1x32xf32>
    %417 = vector.extract_strided_slice %413 {offsets = [0, 32], sizes = [1, 32], strides = [1, 1]} : vector<1x96xf32> to vector<1x32xf32>
    %418 = vector.extract_strided_slice %413 {offsets = [0, 64], sizes = [1, 32], strides = [1, 1]} : vector<1x96xf32> to vector<1x32xf32>
    %419 = arith.mulf %417, %386 : vector<1x32xf32>
    %420 = arith.mulf %416, %415 : vector<1x32xf32>
    %421 = arith.addf %419, %420 : vector<1x32xf32>
    %422 = math.tanh %421 : vector<1x32xf32>
    %423 = arith.mulf %418, %422 : vector<1x32xf32>
    %c7_i32_82 = arith.constant 7 : i32
    %424 = vector.broadcast %c7_i32_82 : i32 to vector<8x32xi32>
    %425 = arith.cmpi eq, %157, %424 : vector<8x32xi32>
    %c16_i32_83 = arith.constant 16 : i32
    %426 = vector.broadcast %c16_i32_83 : i32 to vector<8x32xi32>
    %427 = arith.cmpi slt, %158, %426 : vector<8x32xi32>
    %428 = arith.andi %425, %427 : vector<8x32xi1>
    %429 = vector.shape_cast %423 : vector<1x32xf32> to vector<1x32xf32>
    %430 = vector.broadcast %429 : vector<1x32xf32> to vector<8x32xf32>
    %431 = arith.select %428, %430, %404 : vector<8x32xi1>, vector<8x32xf32>
    %c0_i32_84 = arith.constant 0 : i32
    %432 = vector.broadcast %c0_i32_84 : i32 to vector<8x32xi32>
    %433 = arith.cmpi eq, %157, %432 : vector<8x32xi32>
    %c16_i32_85 = arith.constant 16 : i32
    %434 = vector.broadcast %c16_i32_85 : i32 to vector<8x32xi32>
    %435 = arith.cmpi sge, %158, %434 : vector<8x32xi32>
    %436 = arith.andi %433, %435 : vector<8x32xi1>
    %437 = vector.shape_cast %423 : vector<1x32xf32> to vector<1x32xf32>
    %438 = vector.broadcast %437 : vector<1x32xf32> to vector<8x32xf32>
    %439 = arith.select %436, %438, %431 : vector<8x32xi1>, vector<8x32xf32>
    %c144 = arith.constant 144 : index
    %c0_86 = arith.constant 0 : index
    %440 = vector.load %arg2[%c144, %c0_86] : memref<184x128xf32, #tpu.memory_space<vmem>>, vector<32x128xf32>
    %441 = vector.extract_strided_slice %440 {offsets = [0, 0], sizes = [32, 5], strides = [1, 1]} : vector<32x128xf32> to vector<32x5xf32>
    %c139 = arith.constant 139 : index
    %c0_87 = arith.constant 0 : index
    %442 = vector.load %arg2[%c139, %c0_87] : memref<184x128xf32, #tpu.memory_space<vmem>>, vector<1x128xf32>
    %443 = vector.extract_strided_slice %442 {offsets = [0, 0], sizes = [1, 5], strides = [1, 1]} : vector<1x128xf32> to vector<1x5xf32>
    %cst_88 = arith.constant dense<0.000000e+00> : vector<8x5xf32>
    %444 = tpu.matmul %439, %441, %cst_88 {dimension_numbers = #tpu.dot_dimension_numbers<[1], [0], [0], [1], [0, 0, 1, 1], [], []>, precision = #tpu.contract_precision<fp32>} : vector<8x32xf32>, vector<32x5xf32>, vector<8x5xf32> -> vector<8x5xf32>
    %445 = vector.broadcast %443 : vector<1x5xf32> to vector<8x5xf32>
    %446 = arith.addf %444, %445 : vector<8x5xf32>
    %c176 = arith.constant 176 : index
    %c0_89 = arith.constant 0 : index
    %447 = vector.load %arg2[%c176, %c0_89] : memref<184x128xf32, #tpu.memory_space<vmem>>, vector<5x128xf32>
    %448 = vector.extract_strided_slice %447 {offsets = [0, 0], sizes = [5, 5], strides = [1, 1]} : vector<5x128xf32> to vector<5x5xf32>
    %449 = tpu.iota {dimensions = array<i32: 0>} : vector<5x5xi32>
    %450 = arith.sitofp %449 : vector<5x5xi32> to vector<5x5xf32>
    %451 = tpu.iota {dimensions = array<i32: 1>} : vector<5x5xi32>
    %452 = arith.cmpi eq, %449, %451 : vector<5x5xi32>
    %453 = tpu.iota {dimensions = array<i32: 0>} : vector<5x1xi32>
    %454 = arith.sitofp %453 : vector<5x1xi32> to vector<5x1xf32>
    %cst_90 = arith.constant 3.000000e+00 : f32
    %455 = vector.broadcast %cst_90 : f32 to vector<5x1xf32>
    %456 = arith.cmpf oeq, %454, %455 : vector<5x1xf32>
    %cst_91 = arith.constant 0.000000e+00 : f32
    %cst_92 = arith.constant -1.000000e+04 : f32
    %457 = vector.broadcast %cst_91 : f32 to vector<5x1xf32>
    %458 = vector.broadcast %cst_92 : f32 to vector<5x1xf32>
    %459 = arith.select %456, %457, %458 : vector<5x1xi1>, vector<5x1xf32>
    %460 = vector.broadcast %459 : vector<5x1xf32> to vector<5x5xf32>
    %461 = arith.addf %448, %460 : vector<5x5xf32>
    %cst_93 = arith.constant dense<0xFF800000> : vector<5xf32>
    %462 = vector.multi_reduction <maximumf>, %461, %cst_93 [0] : vector<5x5xf32> to vector<5xf32>
    %463 = vector.shape_cast %462 : vector<5xf32> to vector<1x5xf32>
    %464 = vector.extract_strided_slice %446 {offsets = [0, 0], sizes = [1, 5], strides = [1, 1]} : vector<8x5xf32> to vector<1x5xf32>
    %465 = arith.addf %463, %464 : vector<1x5xf32>
    %cst_94 = arith.constant 0.000000e+00 : f32
    %466 = vector.shape_cast %465 : vector<1x5xf32> to vector<1x5xf32>
    %467 = vector.broadcast %466 : vector<1x5xf32> to vector<5x5xf32>
    %468 = vector.broadcast %cst_94 : f32 to vector<5x5xf32>
    %469 = arith.select %452, %467, %468 : vector<5x5xi1>, vector<5x5xf32>
    %cst_95 = arith.constant dense<0.000000e+00> : vector<5xf32>
    %470 = vector.multi_reduction <add>, %469, %cst_95 [1] : vector<5x5xf32> to vector<5xf32>
    %471 = vector.shape_cast %470 : vector<5xf32> to vector<5x1xf32>
    %472 = vector.broadcast %471 : vector<5x1xf32> to vector<5x5xf32>
    %473 = arith.addf %448, %472 : vector<5x5xf32>
    %cst_96 = arith.constant dense<0xFF800000> : vector<5xf32>
    %474 = vector.multi_reduction <maximumf>, %473, %cst_96 [0] : vector<5x5xf32> to vector<5xf32>
    %475 = vector.shape_cast %474 : vector<5xf32> to vector<1x5xf32>
    %476 = vector.broadcast %475 : vector<1x5xf32> to vector<5x5xf32>
    %477 = arith.cmpf oeq, %473, %476 : vector<5x5xf32>
    %cst_97 = arith.constant 5.000000e+00 : f32
    %478 = vector.broadcast %cst_97 : f32 to vector<5x5xf32>
    %479 = arith.select %477, %450, %478 : vector<5x5xi1>, vector<5x5xf32>
    %cst_98 = arith.constant dense<0x7F800000> : vector<5xf32>
    %480 = vector.multi_reduction <minimumf>, %479, %cst_98 [0] : vector<5x5xf32> to vector<5xf32>
    %481 = vector.shape_cast %480 : vector<5xf32> to vector<1x5xf32>
    %482 = vector.extract_strided_slice %446 {offsets = [1, 0], sizes = [1, 5], strides = [1, 1]} : vector<8x5xf32> to vector<1x5xf32>
    %483 = arith.addf %475, %482 : vector<1x5xf32>
    %cst_99 = arith.constant 0.000000e+00 : f32
    %484 = vector.shape_cast %483 : vector<1x5xf32> to vector<1x5xf32>
    %485 = vector.broadcast %484 : vector<1x5xf32> to vector<5x5xf32>
    %486 = vector.broadcast %cst_99 : f32 to vector<5x5xf32>
    %487 = arith.select %452, %485, %486 : vector<5x5xi1>, vector<5x5xf32>
    %cst_100 = arith.constant dense<0.000000e+00> : vector<5xf32>
    %488 = vector.multi_reduction <add>, %487, %cst_100 [1] : vector<5x5xf32> to vector<5xf32>
    %489 = vector.shape_cast %488 : vector<5xf32> to vector<5x1xf32>
    %490 = vector.broadcast %489 : vector<5x1xf32> to vector<5x5xf32>
    %491 = arith.addf %448, %490 : vector<5x5xf32>
    %cst_101 = arith.constant dense<0xFF800000> : vector<5xf32>
    %492 = vector.multi_reduction <maximumf>, %491, %cst_101 [0] : vector<5x5xf32> to vector<5xf32>
    %493 = vector.shape_cast %492 : vector<5xf32> to vector<1x5xf32>
    %494 = vector.broadcast %493 : vector<1x5xf32> to vector<5x5xf32>
    %495 = arith.cmpf oeq, %491, %494 : vector<5x5xf32>
    %cst_102 = arith.constant 5.000000e+00 : f32
    %496 = vector.broadcast %cst_102 : f32 to vector<5x5xf32>
    %497 = arith.select %495, %450, %496 : vector<5x5xi1>, vector<5x5xf32>
    %cst_103 = arith.constant dense<0x7F800000> : vector<5xf32>
    %498 = vector.multi_reduction <minimumf>, %497, %cst_103 [0] : vector<5x5xf32> to vector<5xf32>
    %499 = vector.shape_cast %498 : vector<5xf32> to vector<1x5xf32>
    %500 = vector.extract_strided_slice %446 {offsets = [2, 0], sizes = [1, 5], strides = [1, 1]} : vector<8x5xf32> to vector<1x5xf32>
    %501 = arith.addf %493, %500 : vector<1x5xf32>
    %cst_104 = arith.constant 0.000000e+00 : f32
    %502 = vector.shape_cast %501 : vector<1x5xf32> to vector<1x5xf32>
    %503 = vector.broadcast %502 : vector<1x5xf32> to vector<5x5xf32>
    %504 = vector.broadcast %cst_104 : f32 to vector<5x5xf32>
    %505 = arith.select %452, %503, %504 : vector<5x5xi1>, vector<5x5xf32>
    %cst_105 = arith.constant dense<0.000000e+00> : vector<5xf32>
    %506 = vector.multi_reduction <add>, %505, %cst_105 [1] : vector<5x5xf32> to vector<5xf32>
    %507 = vector.shape_cast %506 : vector<5xf32> to vector<5x1xf32>
    %508 = vector.broadcast %507 : vector<5x1xf32> to vector<5x5xf32>
    %509 = arith.addf %448, %508 : vector<5x5xf32>
    %cst_106 = arith.constant dense<0xFF800000> : vector<5xf32>
    %510 = vector.multi_reduction <maximumf>, %509, %cst_106 [0] : vector<5x5xf32> to vector<5xf32>
    %511 = vector.shape_cast %510 : vector<5xf32> to vector<1x5xf32>
    %512 = vector.broadcast %511 : vector<1x5xf32> to vector<5x5xf32>
    %513 = arith.cmpf oeq, %509, %512 : vector<5x5xf32>
    %cst_107 = arith.constant 5.000000e+00 : f32
    %514 = vector.broadcast %cst_107 : f32 to vector<5x5xf32>
    %515 = arith.select %513, %450, %514 : vector<5x5xi1>, vector<5x5xf32>
    %cst_108 = arith.constant dense<0x7F800000> : vector<5xf32>
    %516 = vector.multi_reduction <minimumf>, %515, %cst_108 [0] : vector<5x5xf32> to vector<5xf32>
    %517 = vector.shape_cast %516 : vector<5xf32> to vector<1x5xf32>
    %518 = vector.extract_strided_slice %446 {offsets = [3, 0], sizes = [1, 5], strides = [1, 1]} : vector<8x5xf32> to vector<1x5xf32>
    %519 = arith.addf %511, %518 : vector<1x5xf32>
    %cst_109 = arith.constant 0.000000e+00 : f32
    %520 = vector.shape_cast %519 : vector<1x5xf32> to vector<1x5xf32>
    %521 = vector.broadcast %520 : vector<1x5xf32> to vector<5x5xf32>
    %522 = vector.broadcast %cst_109 : f32 to vector<5x5xf32>
    %523 = arith.select %452, %521, %522 : vector<5x5xi1>, vector<5x5xf32>
    %cst_110 = arith.constant dense<0.000000e+00> : vector<5xf32>
    %524 = vector.multi_reduction <add>, %523, %cst_110 [1] : vector<5x5xf32> to vector<5xf32>
    %525 = vector.shape_cast %524 : vector<5xf32> to vector<5x1xf32>
    %526 = vector.broadcast %525 : vector<5x1xf32> to vector<5x5xf32>
    %527 = arith.addf %448, %526 : vector<5x5xf32>
    %cst_111 = arith.constant dense<0xFF800000> : vector<5xf32>
    %528 = vector.multi_reduction <maximumf>, %527, %cst_111 [0] : vector<5x5xf32> to vector<5xf32>
    %529 = vector.shape_cast %528 : vector<5xf32> to vector<1x5xf32>
    %530 = vector.broadcast %529 : vector<1x5xf32> to vector<5x5xf32>
    %531 = arith.cmpf oeq, %527, %530 : vector<5x5xf32>
    %cst_112 = arith.constant 5.000000e+00 : f32
    %532 = vector.broadcast %cst_112 : f32 to vector<5x5xf32>
    %533 = arith.select %531, %450, %532 : vector<5x5xi1>, vector<5x5xf32>
    %cst_113 = arith.constant dense<0x7F800000> : vector<5xf32>
    %534 = vector.multi_reduction <minimumf>, %533, %cst_113 [0] : vector<5x5xf32> to vector<5xf32>
    %535 = vector.shape_cast %534 : vector<5xf32> to vector<1x5xf32>
    %536 = vector.extract_strided_slice %446 {offsets = [4, 0], sizes = [1, 5], strides = [1, 1]} : vector<8x5xf32> to vector<1x5xf32>
    %537 = arith.addf %529, %536 : vector<1x5xf32>
    %cst_114 = arith.constant 0.000000e+00 : f32
    %538 = vector.shape_cast %537 : vector<1x5xf32> to vector<1x5xf32>
    %539 = vector.broadcast %538 : vector<1x5xf32> to vector<5x5xf32>
    %540 = vector.broadcast %cst_114 : f32 to vector<5x5xf32>
    %541 = arith.select %452, %539, %540 : vector<5x5xi1>, vector<5x5xf32>
    %cst_115 = arith.constant dense<0.000000e+00> : vector<5xf32>
    %542 = vector.multi_reduction <add>, %541, %cst_115 [1] : vector<5x5xf32> to vector<5xf32>
    %543 = vector.shape_cast %542 : vector<5xf32> to vector<5x1xf32>
    %544 = vector.broadcast %543 : vector<5x1xf32> to vector<5x5xf32>
    %545 = arith.addf %448, %544 : vector<5x5xf32>
    %cst_116 = arith.constant dense<0xFF800000> : vector<5xf32>
    %546 = vector.multi_reduction <maximumf>, %545, %cst_116 [0] : vector<5x5xf32> to vector<5xf32>
    %547 = vector.shape_cast %546 : vector<5xf32> to vector<1x5xf32>
    %548 = vector.broadcast %547 : vector<1x5xf32> to vector<5x5xf32>
    %549 = arith.cmpf oeq, %545, %548 : vector<5x5xf32>
    %cst_117 = arith.constant 5.000000e+00 : f32
    %550 = vector.broadcast %cst_117 : f32 to vector<5x5xf32>
    %551 = arith.select %549, %450, %550 : vector<5x5xi1>, vector<5x5xf32>
    %cst_118 = arith.constant dense<0x7F800000> : vector<5xf32>
    %552 = vector.multi_reduction <minimumf>, %551, %cst_118 [0] : vector<5x5xf32> to vector<5xf32>
    %553 = vector.shape_cast %552 : vector<5xf32> to vector<1x5xf32>
    %554 = vector.extract_strided_slice %446 {offsets = [5, 0], sizes = [1, 5], strides = [1, 1]} : vector<8x5xf32> to vector<1x5xf32>
    %555 = arith.addf %547, %554 : vector<1x5xf32>
    %cst_119 = arith.constant 0.000000e+00 : f32
    %556 = vector.shape_cast %555 : vector<1x5xf32> to vector<1x5xf32>
    %557 = vector.broadcast %556 : vector<1x5xf32> to vector<5x5xf32>
    %558 = vector.broadcast %cst_119 : f32 to vector<5x5xf32>
    %559 = arith.select %452, %557, %558 : vector<5x5xi1>, vector<5x5xf32>
    %cst_120 = arith.constant dense<0.000000e+00> : vector<5xf32>
    %560 = vector.multi_reduction <add>, %559, %cst_120 [1] : vector<5x5xf32> to vector<5xf32>
    %561 = vector.shape_cast %560 : vector<5xf32> to vector<5x1xf32>
    %562 = vector.broadcast %561 : vector<5x1xf32> to vector<5x5xf32>
    %563 = arith.addf %448, %562 : vector<5x5xf32>
    %cst_121 = arith.constant dense<0xFF800000> : vector<5xf32>
    %564 = vector.multi_reduction <maximumf>, %563, %cst_121 [0] : vector<5x5xf32> to vector<5xf32>
    %565 = vector.shape_cast %564 : vector<5xf32> to vector<1x5xf32>
    %566 = vector.broadcast %565 : vector<1x5xf32> to vector<5x5xf32>
    %567 = arith.cmpf oeq, %563, %566 : vector<5x5xf32>
    %cst_122 = arith.constant 5.000000e+00 : f32
    %568 = vector.broadcast %cst_122 : f32 to vector<5x5xf32>
    %569 = arith.select %567, %450, %568 : vector<5x5xi1>, vector<5x5xf32>
    %cst_123 = arith.constant dense<0x7F800000> : vector<5xf32>
    %570 = vector.multi_reduction <minimumf>, %569, %cst_123 [0] : vector<5x5xf32> to vector<5xf32>
    %571 = vector.shape_cast %570 : vector<5xf32> to vector<1x5xf32>
    %572 = vector.extract_strided_slice %446 {offsets = [6, 0], sizes = [1, 5], strides = [1, 1]} : vector<8x5xf32> to vector<1x5xf32>
    %573 = arith.addf %565, %572 : vector<1x5xf32>
    %cst_124 = arith.constant 0.000000e+00 : f32
    %574 = vector.shape_cast %573 : vector<1x5xf32> to vector<1x5xf32>
    %575 = vector.broadcast %574 : vector<1x5xf32> to vector<5x5xf32>
    %576 = vector.broadcast %cst_124 : f32 to vector<5x5xf32>
    %577 = arith.select %452, %575, %576 : vector<5x5xi1>, vector<5x5xf32>
    %cst_125 = arith.constant dense<0.000000e+00> : vector<5xf32>
    %578 = vector.multi_reduction <add>, %577, %cst_125 [1] : vector<5x5xf32> to vector<5xf32>
    %579 = vector.shape_cast %578 : vector<5xf32> to vector<5x1xf32>
    %580 = vector.broadcast %579 : vector<5x1xf32> to vector<5x5xf32>
    %581 = arith.addf %448, %580 : vector<5x5xf32>
    %cst_126 = arith.constant dense<0xFF800000> : vector<5xf32>
    %582 = vector.multi_reduction <maximumf>, %581, %cst_126 [0] : vector<5x5xf32> to vector<5xf32>
    %583 = vector.shape_cast %582 : vector<5xf32> to vector<1x5xf32>
    %584 = vector.broadcast %583 : vector<1x5xf32> to vector<5x5xf32>
    %585 = arith.cmpf oeq, %581, %584 : vector<5x5xf32>
    %cst_127 = arith.constant 5.000000e+00 : f32
    %586 = vector.broadcast %cst_127 : f32 to vector<5x5xf32>
    %587 = arith.select %585, %450, %586 : vector<5x5xi1>, vector<5x5xf32>
    %cst_128 = arith.constant dense<0x7F800000> : vector<5xf32>
    %588 = vector.multi_reduction <minimumf>, %587, %cst_128 [0] : vector<5x5xf32> to vector<5xf32>
    %589 = vector.shape_cast %588 : vector<5xf32> to vector<1x5xf32>
    %590 = vector.extract_strided_slice %446 {offsets = [7, 0], sizes = [1, 5], strides = [1, 1]} : vector<8x5xf32> to vector<1x5xf32>
    %591 = arith.addf %583, %590 : vector<1x5xf32>
    %cst_129 = arith.constant 0.000000e+00 : f32
    %592 = vector.shape_cast %591 : vector<1x5xf32> to vector<1x5xf32>
    %593 = vector.broadcast %592 : vector<1x5xf32> to vector<5x5xf32>
    %594 = vector.broadcast %cst_129 : f32 to vector<5x5xf32>
    %595 = arith.select %452, %593, %594 : vector<5x5xi1>, vector<5x5xf32>
    %cst_130 = arith.constant dense<0.000000e+00> : vector<5xf32>
    %596 = vector.multi_reduction <add>, %595, %cst_130 [1] : vector<5x5xf32> to vector<5xf32>
    %597 = vector.shape_cast %596 : vector<5xf32> to vector<5x1xf32>
    %598 = vector.extract_strided_slice %448 {offsets = [0, 4], sizes = [5, 1], strides = [1, 1]} : vector<5x5xf32> to vector<5x1xf32>
    %599 = arith.addf %597, %598 : vector<5x1xf32>
    %cst_131 = arith.constant dense<0xFF800000> : vector<1xf32>
    %600 = vector.multi_reduction <maximumf>, %599, %cst_131 [0] : vector<5x1xf32> to vector<1xf32>
    %601 = vector.shape_cast %600 : vector<1xf32> to vector<1x1xf32>
    %602 = vector.broadcast %601 : vector<1x1xf32> to vector<5x1xf32>
    %603 = arith.cmpf oeq, %599, %602 : vector<5x1xf32>
    %cst_132 = arith.constant 5.000000e+00 : f32
    %604 = vector.broadcast %cst_132 : f32 to vector<5x1xf32>
    %605 = arith.select %603, %454, %604 : vector<5x1xi1>, vector<5x1xf32>
    %cst_133 = arith.constant dense<0x7F800000> : vector<1xf32>
    %606 = vector.multi_reduction <minimumf>, %605, %cst_133 [0] : vector<5x1xf32> to vector<1xf32>
    %607 = vector.shape_cast %606 : vector<1xf32> to vector<1x1xf32>
    %608 = tpu.iota {dimensions = array<i32: 1>} : vector<1x128xi32>
    %609 = tpu.iota {dimensions = array<i32: 1>} : vector<1x5xi32>
    %610 = arith.sitofp %609 : vector<1x5xi32> to vector<1x5xf32>
    %c0_i32_134 = arith.constant 0 : i32
    %611 = vector.broadcast %c0_i32_134 : i32 to vector<1x128xi32>
    %612 = arith.cmpi eq, %608, %611 : vector<1x128xi32>
    %cst_135 = arith.constant 0.000000e+00 : f32
    %613 = vector.shape_cast %601 : vector<1x1xf32> to vector<1x1xf32>
    %614 = vector.broadcast %613 : vector<1x1xf32> to vector<1x128xf32>
    %615 = vector.broadcast %cst_135 : f32 to vector<1x128xf32>
    %616 = arith.select %612, %614, %615 : vector<1x128xi1>, vector<1x128xf32>
    %c8_i32 = arith.constant 8 : i32
    %617 = vector.broadcast %c8_i32 : i32 to vector<1x128xi32>
    %618 = arith.cmpi eq, %608, %617 : vector<1x128xi32>
    %619 = vector.shape_cast %607 : vector<1x1xf32> to vector<1x1xf32>
    %620 = vector.broadcast %619 : vector<1x1xf32> to vector<1x128xf32>
    %621 = arith.select %618, %620, %616 : vector<1x128xi1>, vector<1x128xf32>
    %622 = vector.broadcast %607 : vector<1x1xf32> to vector<1x5xf32>
    %623 = arith.cmpf oeq, %610, %622 : vector<1x5xf32>
    %cst_136 = arith.constant 0.000000e+00 : f32
    %624 = vector.broadcast %cst_136 : f32 to vector<1x5xf32>
    %625 = arith.select %623, %589, %624 : vector<1x5xi1>, vector<1x5xf32>
    %cst_137 = arith.constant dense<0.000000e+00> : vector<1xf32>
    %626 = vector.multi_reduction <add>, %625, %cst_137 [1] : vector<1x5xf32> to vector<1xf32>
    %627 = vector.shape_cast %626 : vector<1xf32> to vector<1x1xf32>
    %c7_i32_138 = arith.constant 7 : i32
    %628 = vector.broadcast %c7_i32_138 : i32 to vector<1x128xi32>
    %629 = arith.cmpi eq, %608, %628 : vector<1x128xi32>
    %630 = vector.shape_cast %627 : vector<1x1xf32> to vector<1x1xf32>
    %631 = vector.broadcast %630 : vector<1x1xf32> to vector<1x128xf32>
    %632 = arith.select %629, %631, %621 : vector<1x128xi1>, vector<1x128xf32>
    %633 = vector.broadcast %627 : vector<1x1xf32> to vector<1x5xf32>
    %634 = arith.cmpf oeq, %610, %633 : vector<1x5xf32>
    %cst_139 = arith.constant 0.000000e+00 : f32
    %635 = vector.broadcast %cst_139 : f32 to vector<1x5xf32>
    %636 = arith.select %634, %571, %635 : vector<1x5xi1>, vector<1x5xf32>
    %cst_140 = arith.constant dense<0.000000e+00> : vector<1xf32>
    %637 = vector.multi_reduction <add>, %636, %cst_140 [1] : vector<1x5xf32> to vector<1xf32>
    %638 = vector.shape_cast %637 : vector<1xf32> to vector<1x1xf32>
    %c6_i32_141 = arith.constant 6 : i32
    %639 = vector.broadcast %c6_i32_141 : i32 to vector<1x128xi32>
    %640 = arith.cmpi eq, %608, %639 : vector<1x128xi32>
    %641 = vector.shape_cast %638 : vector<1x1xf32> to vector<1x1xf32>
    %642 = vector.broadcast %641 : vector<1x1xf32> to vector<1x128xf32>
    %643 = arith.select %640, %642, %632 : vector<1x128xi1>, vector<1x128xf32>
    %644 = vector.broadcast %638 : vector<1x1xf32> to vector<1x5xf32>
    %645 = arith.cmpf oeq, %610, %644 : vector<1x5xf32>
    %cst_142 = arith.constant 0.000000e+00 : f32
    %646 = vector.broadcast %cst_142 : f32 to vector<1x5xf32>
    %647 = arith.select %645, %553, %646 : vector<1x5xi1>, vector<1x5xf32>
    %cst_143 = arith.constant dense<0.000000e+00> : vector<1xf32>
    %648 = vector.multi_reduction <add>, %647, %cst_143 [1] : vector<1x5xf32> to vector<1xf32>
    %649 = vector.shape_cast %648 : vector<1xf32> to vector<1x1xf32>
    %c5_i32_144 = arith.constant 5 : i32
    %650 = vector.broadcast %c5_i32_144 : i32 to vector<1x128xi32>
    %651 = arith.cmpi eq, %608, %650 : vector<1x128xi32>
    %652 = vector.shape_cast %649 : vector<1x1xf32> to vector<1x1xf32>
    %653 = vector.broadcast %652 : vector<1x1xf32> to vector<1x128xf32>
    %654 = arith.select %651, %653, %643 : vector<1x128xi1>, vector<1x128xf32>
    %655 = vector.broadcast %649 : vector<1x1xf32> to vector<1x5xf32>
    %656 = arith.cmpf oeq, %610, %655 : vector<1x5xf32>
    %cst_145 = arith.constant 0.000000e+00 : f32
    %657 = vector.broadcast %cst_145 : f32 to vector<1x5xf32>
    %658 = arith.select %656, %535, %657 : vector<1x5xi1>, vector<1x5xf32>
    %cst_146 = arith.constant dense<0.000000e+00> : vector<1xf32>
    %659 = vector.multi_reduction <add>, %658, %cst_146 [1] : vector<1x5xf32> to vector<1xf32>
    %660 = vector.shape_cast %659 : vector<1xf32> to vector<1x1xf32>
    %c4_i32_147 = arith.constant 4 : i32
    %661 = vector.broadcast %c4_i32_147 : i32 to vector<1x128xi32>
    %662 = arith.cmpi eq, %608, %661 : vector<1x128xi32>
    %663 = vector.shape_cast %660 : vector<1x1xf32> to vector<1x1xf32>
    %664 = vector.broadcast %663 : vector<1x1xf32> to vector<1x128xf32>
    %665 = arith.select %662, %664, %654 : vector<1x128xi1>, vector<1x128xf32>
    %666 = vector.broadcast %660 : vector<1x1xf32> to vector<1x5xf32>
    %667 = arith.cmpf oeq, %610, %666 : vector<1x5xf32>
    %cst_148 = arith.constant 0.000000e+00 : f32
    %668 = vector.broadcast %cst_148 : f32 to vector<1x5xf32>
    %669 = arith.select %667, %517, %668 : vector<1x5xi1>, vector<1x5xf32>
    %cst_149 = arith.constant dense<0.000000e+00> : vector<1xf32>
    %670 = vector.multi_reduction <add>, %669, %cst_149 [1] : vector<1x5xf32> to vector<1xf32>
    %671 = vector.shape_cast %670 : vector<1xf32> to vector<1x1xf32>
    %c3_i32_150 = arith.constant 3 : i32
    %672 = vector.broadcast %c3_i32_150 : i32 to vector<1x128xi32>
    %673 = arith.cmpi eq, %608, %672 : vector<1x128xi32>
    %674 = vector.shape_cast %671 : vector<1x1xf32> to vector<1x1xf32>
    %675 = vector.broadcast %674 : vector<1x1xf32> to vector<1x128xf32>
    %676 = arith.select %673, %675, %665 : vector<1x128xi1>, vector<1x128xf32>
    %677 = vector.broadcast %671 : vector<1x1xf32> to vector<1x5xf32>
    %678 = arith.cmpf oeq, %610, %677 : vector<1x5xf32>
    %cst_151 = arith.constant 0.000000e+00 : f32
    %679 = vector.broadcast %cst_151 : f32 to vector<1x5xf32>
    %680 = arith.select %678, %499, %679 : vector<1x5xi1>, vector<1x5xf32>
    %cst_152 = arith.constant dense<0.000000e+00> : vector<1xf32>
    %681 = vector.multi_reduction <add>, %680, %cst_152 [1] : vector<1x5xf32> to vector<1xf32>
    %682 = vector.shape_cast %681 : vector<1xf32> to vector<1x1xf32>
    %c2_i32_153 = arith.constant 2 : i32
    %683 = vector.broadcast %c2_i32_153 : i32 to vector<1x128xi32>
    %684 = arith.cmpi eq, %608, %683 : vector<1x128xi32>
    %685 = vector.shape_cast %682 : vector<1x1xf32> to vector<1x1xf32>
    %686 = vector.broadcast %685 : vector<1x1xf32> to vector<1x128xf32>
    %687 = arith.select %684, %686, %676 : vector<1x128xi1>, vector<1x128xf32>
    %688 = vector.broadcast %682 : vector<1x1xf32> to vector<1x5xf32>
    %689 = arith.cmpf oeq, %610, %688 : vector<1x5xf32>
    %cst_154 = arith.constant 0.000000e+00 : f32
    %690 = vector.broadcast %cst_154 : f32 to vector<1x5xf32>
    %691 = arith.select %689, %481, %690 : vector<1x5xi1>, vector<1x5xf32>
    %cst_155 = arith.constant dense<0.000000e+00> : vector<1xf32>
    %692 = vector.multi_reduction <add>, %691, %cst_155 [1] : vector<1x5xf32> to vector<1xf32>
    %693 = vector.shape_cast %692 : vector<1xf32> to vector<1x1xf32>
    %c1_i32_156 = arith.constant 1 : i32
    %694 = vector.broadcast %c1_i32_156 : i32 to vector<1x128xi32>
    %695 = arith.cmpi eq, %608, %694 : vector<1x128xi32>
    %696 = vector.shape_cast %693 : vector<1x1xf32> to vector<1x1xf32>
    %697 = vector.broadcast %696 : vector<1x1xf32> to vector<1x128xf32>
    %698 = arith.select %695, %697, %687 : vector<1x128xi1>, vector<1x128xf32>
    %c0_157 = arith.constant 0 : index
    %c0_158 = arith.constant 0 : index
    %c0_159 = arith.constant 0 : index
    %699 = vector.load %arg3[%c0_157, %c0_158, %c0_159] : memref<1x1x128xf32, #tpu.memory_space<vmem>>, vector<1x1x128xf32>
    %700 = vector.shape_cast %699 : vector<1x1x128xf32> to vector<1x128xf32>
    %701 = vector.shape_cast %698 : vector<1x128xf32> to vector<1x1x128xf32>
    tpu.vector_store %arg3[%c0_157, %c0_158, %c0_159], %701 {strides = array<i32>} : memref<1x1x128xf32, #tpu.memory_space<vmem>>, vector<1x1x128xf32>,
    return
  }
  func.func @transform_0(%arg0: i32, %arg1: memref<4x8xi32, #tpu.memory_space<smem>>) -> (i32, i32) {
    %c0_i32 = arith.constant 0 : i32
    %c0_i32_0 = arith.constant 0 : i32
    %c0_i32_1 = arith.constant 0 : i32
    return %c0_i32, %c0_i32_0 : i32, i32
  }
  func.func @transform_1(%arg0: i32, %arg1: memref<4x8xi32, #tpu.memory_space<smem>>) -> (i32, i32, i32) {
    %c0_i32 = arith.constant 0 : i32
    %c0_i32_0 = arith.constant 0 : i32
    %c0_i32_1 = arith.constant 0 : i32
    return %arg0, %c0_i32, %c0_i32_0 : i32, i32, i32
  }
}

</mosaic_0001>

<bundles_post_ra>
// kernel: bilstm_crf_forward.1
= control target key start
LH: loop header
LB: loop body
LE: loop exit
PB: predicated region body
PF: predicated region fallthrough
CT: control target
= control target key end

     0   :  { %s4490_s0 = inlined_call_operand.hbm [shape: s32[4,8], index: 0, kind: input, shape index: {}]   ;;  %s4491_s1 = inlined_call_operand.hbm [shape: f32[184,128], index: 1, kind: input, shape index: {}]   ;;  %s4492_s2 = inlined_call_operand.vmem [shape: f32[4,1,128], index: 2, kind: output, shape index: {}]  }
   0x1   :  { %s3417_s11 = scalar_lea.hbm %s4490_s0, 64 }
   0x2   :  { %p3418_p0 = scmp.ne.s32.totalorder %s4490_s0, %s3417_s11  ;;  %p3421_p1 = scmp.lt.u32.totalorder %s3417_s11, %s4490_s0 }
   0x4   :  { %p3423_p2 = pnand %p3421_p1, %p3418_p0 }
   0x6   :  { %3426 = shalt.err (!%p3423_p2)  }
   0x7   :  { %s3469_s16 = smov [#allocation3]  }
   0x8   :  { %8 = dma.hbm_to_smem %s4490_s0, 64, %s3469_s16, [#allocation2] }
   0x9   :  { %3459 = dma.done.wait [#allocation2], 64 }
   0xa   :  { %3460 = vsyncadd [#allocation2], 4294967232 }
   0xb   :  { %10 = sfence }
   0xc   :  { %11 = vsyncpa [#allocation5], 0  ;;  %s3507_s19 = smov 0  }
   0xd LB: > { %s3513_s20 = sadd.s32 4294967295, %s3467_s19   ;;  %p2602_p3 = scmp.ge.s32.totalorder %s3467_s19, 1  ;;  %s3467_s19 = sphi %s3507_s19, %s17_s19  }
   0xe   : > { %p69_p4 = scmp.lt.s32.totalorder %s3467_s19, 5  ;;  %s3470_s0 = smov [#allocation4]  }
   0xf   : > { %s81_s21 = sshll.u32 %s3470_s0, 4  ;;  %p4493_p6 = scmp.eq.s32.totalorder %s3513_s20, 0  ;;  %s82_s21 = int_to_ptr.vmem [resolvable:$true] %s81_s21 }
  0x10   : > { %p3517_p5 = pnand %p2602_p3, %p69_p4  ;;  %s3427_s26 = scalar_lea.hbm %s4491_s1, 2944 }
  0x11   : > { %p3428_p9 = scmp.ne.s32.totalorder %s4491_s1, %s3427_s26  ;;  %p3434_p13 = scmp.lt.u32.totalorder %s3427_s26, %s4491_s1 }
  0x12   : > { %s4504_s22 = scalar_select %p3517_p5, 1, 0 }
  0x13   : > { %p3326_p7 = pneg %p3517_p5 }
  0x15   : > { %p3526_p8 = pnand %p4493_p6, %p3326_p7 }
  0x17   : > { %p3429_p10 = pneg %p3526_p8 }
  0x19   : > { %p3430_p11 = pnand %p3429_p10, %p3428_p9 }
  0x1b   : > { %p3431_p12 = pneg %p3430_p11 }
  0x1d   : > { %p3436_p0 = pnand %p3434_p13, %p3431_p12 }
  0x1f   : > { %3439 = shalt.err (!%p3436_p0)
}
  0x20   : > { %s3440_s3 = scalar_lea.vmem %s82_s21, 2944  ;;  %p3448_p4 = scmp.lt.s32.totalorder %s82_s21, %s82_s21 }
  0x21   : > { %p3441_p1 = scmp.ne.s32.totalorder %s82_s21, %s3440_s3  ;;  %p3449_p7 = scmp.lt.s32.totalorder %s3440_s3, %s3440_s3 }
  0x23   : > { %p3443_p2 = pnand %p3441_p1, %p3429_p10  ;;  %p3450_p6 = por %p3449_p7, %p3448_p4 }
  0x25   : > { %p3444_p3 = pneg %p3443_p2 }
  0x27   : > { %p3451_p5 = pnand %p3450_p6, %p3444_p3 }
  0x29   : > { %3454 = shalt.err (!%p3451_p5)
}
  0x2a   : > { %s3471_s4 = smov 128   ;;  %s3472_s5 = smov 8  }
  0x2b   : > { %3329 = dma.hbm_to_vmem [thread:$0]  (!%p3526_p8), %s4491_s1, 2944, %s82_s21, [#allocation5], %s3471_s4, %s3471_s4, %s3472_s5  }
  0x2c   : > { %p4506_p9 = scmp.ne.s32.totalorder %s4504_s22, 0 }
  0x2d   : > { %p4507_p11 = scmp.eq.s32.totalorder (!%p4506_p9), %s3513_s20, 0 }
  0x2e   : > { %97 = sbr.rel (%p4506_p9) target bundleno = 8551 (0x2167), region = 24 }
  0x35   : > { %3462 = dma.done.wait (%p4507_p11), [#allocation5], 2944   ;;  %p4508_p10 = pmov %p4507_p11 }
  0x36   : > { %s3553_s8 = sshll.u32 %s3513_s20, 7  ;;  %v3473_v0 = vmov 0.0|0.0   ;;  %vm4502_vm0 = vmmov 0   ;;  %v3475_v1 = vmov 0.0   ;;  %v113_v2 = vlaneseq  ;;  %v3565_v3 = vld [vmem:[#allocation4] sm:$0xff]  ;;  %v3567_v4 = vld [vmem:[#allocation4 + $0x8] sm:$0xff] }
  0x37   : > { %3464 = vsyncadd (%p4508_p10), [#allocation5], 4294964352  ;;  %3127 = vmatprep.subr.bf16.mxu0 %v3473_v0  ;;  %2836 = vmatprep.mubr.msk.f32.mxu0 %vm4502_vm0, %v3475_v1  ;;  %s3559_s9 = sld [smem:[#allocation3 + %s3553_s8]]  ;;  %s119_s10 = sadd.s32 7, %s3553_s8  ;;  %v3569_v5 = vld [vmem:[#allocation4 + $0x10] sm:$0xff]  ;;  %v252_v8 = vand.u32 4294901760, %v3565_v3 }
  0x38   : > { %3109 = vmatprep.subr.bf16.mxu1 %v3473_v0  ;;  %2807 = vmatprep.mubr.msk.f32.mxu1 %vm4502_vm0, %v3475_v1  ;;  %v3571_v6 = vand.u32 127, %v113_v2  ;;  %v3573_v7 = vshrl.u32 %v113_v2, 7  ;;  %s133_s11 = sadd.s32 1, %s3553_s8  ;;  %v255_v9 = vand.u32 4294901760, %v3567_v4  ;;  %v3578_v10 = vld [vmem:[#allocation4 + $0x18] sm:$0xff]  ;;  %v258_v11 = vand.u32 4294901760, %v3569_v5 }
  0x39   : > { %v3581_v12 = vld [vmem:[#allocation4 + $0x20] sm:$0xff]  ;;  %v3583_v13 = vld [vmem:[#allocation4 + $0x28] sm:$0xff]  ;;  %v261_v14 = vand.u32 4294901760, %v3578_v10  ;;  %v3588_v17 = vld [vmem:[#allocation4 + $0x30] sm:$0xff]  ;;  %s135_s12 = sadd.s32 6, %s3553_s8  ;;  %v3597_v20 = vsub.f32 %v3565_v3, %v252_v8  ;;  %s3610_s13 = sld [smem:[#allocation3 + %s119_s10]] }
  0x3a   : > { %v264_v15 = vand.u32 4294901760, %v3581_v12  ;;  %v267_v16 = vand.u32 4294901760, %v3583_v13  ;;  %v3590_v18 = vld [vmem:[#allocation4 + $0x38] sm:$0xff]  ;;  %v3602_v21 = vsub.f32 %v3567_v4, %v255_v9  ;;  %v3607_v22 = vsub.f32 %v3569_v5, %v258_v11  ;;  %s3628_s14 = sld [smem:[#allocation3 + %s133_s11]]  ;;  %s151_s15 = sadd.s32 5, %s3553_s8  ;;  %v3673_v44 = vld [vmem:[#allocation4 + $0x40] sm:$0xff] }
  0x3b   : > { %v4500_v23 = vand.u32 4294901760, %v3588_v17  ;;  %v3615_v24 = vsub.f32 %v3578_v10, %v261_v14  ;;  %v4499_v27 = vand.u32 4294901760, %v3590_v18  ;;  %v342_v28 = vand.u32 4294901760, %v3597_v20  ;;  %s3639_s16 = sld [smem:[#allocation3 + %s135_s12]]  ;;  %s149_s17 = sadd.s32 2, %s3553_s8  ;;  %v3675_v45 = vld [vmem:[#allocation4 + $0x48] sm:$0xff] }
  0x3c   : > { %v3620_v25 = vsub.f32 %v3581_v12, %v264_v15  ;;  %v3625_v26 = vsub.f32 %v3583_v13, %v267_v16  ;;  %v349_v29 = vand.u32 4294901760, %v3602_v21  ;;  %v356_v30 = vand.u32 4294901760, %v3607_v22  ;;  %s3661_s18 = sld [smem:[#allocation3 + %s151_s15]]  ;;  %s167_s21 = sadd.s32 4, %s3553_s8  ;;  %v3683_v50 = vld [vmem:[#allocation4 + $0x50] sm:$0xff]  ;;  %v3690_v55 = vld [vmem:[#allocation4 + $0x58] sm:$0xff] }
  0x3d   : > { %v121_v19 = vstv %s3559_s9  ;;  %v3637_v31 = vsub.f32 %v3588_v17, %v4500_v23  ;;  %v363_v32 = vand.u32 4294901760, %v3615_v24  ;;  %v3648_v35 = vsub.f32 %v3590_v18, %v4499_v27  ;;  %s3677_s0 = sld [smem:[#allocation3 + %s149_s17]]  ;;  %s165_s22 = sadd.s32 3, %s3553_s8  ;;  %v241_v56 = vld [vmem:[#allocation4 + $0x60] sm:$0xff] }
  0x3e   : > { %v370_v33 = vand.u32 4294901760, %v3620_v25  ;;  %v377_v34 = vand.u32 4294901760, %v3625_v26  ;;  %v343_v36 = vsub.f32 %v3597_v20, %v342_v28  ;;  %v350_v37 = vsub.f32 %v3602_v21, %v349_v29  ;;  %s3701_s24 = sld [smem:[#allocation3 + %s167_s21]]  ;;  %s219_s4 = sadd.s32 50, %s3559_s9 }
  0x3f   : > { %v357_v38 = vsub.f32 %v3607_v22, %v356_v30  ;;  %v384_v39 = vand.u32 4294901760, %v3637_v31  ;;  %vm127_vm1 = vcmp.eq.s32.totalorder %v3573_v7, 0  ;;  %v364_v40 = vsub.f32 %v3615_v24, %v363_v32  ;;  %s123_s23 = sadd.s32 50, %s3610_s13  ;;  %s3705_s25 = sld [smem:[#allocation3 + %s165_s22]] }
  0x40   : > { %v371_v41 = vsub.f32 %v3620_v25, %v370_v33  ;;  %v378_v42 = vsub.f32 %v3625_v26, %v377_v34  ;;  %v391_v43 = vand.u32 4294901760, %v3648_v35  ;;  %v344_v46 = vand.u32 4294901760, %v343_v36  ;;  %s207_s3 = sadd.s32 50, %s3628_s14  ;;  %s3476_s5 = smov 32  }
  0x41   : > { %v351_v47 = vand.u32 4294901760, %v350_v37  ;;  %v358_v48 = vand.u32 4294901760, %v357_v38  ;;  %v385_v49 = vsub.f32 %v3637_v31, %v384_v39  ;;  %vm143_vm2 = vcmp.eq.s32.totalorder %v3573_v7, 1  ;;  %s139_s26 = sadd.s32 50, %s3639_s16  ;;  %s3477_s6 = smov 64  }
  0x42   : > { %v365_v51 = vand.u32 4294901760, %v364_v40  ;;  %v372_v52 = vand.u32 4294901760, %v371_v41  ;;  %v379_v53 = vand.u32 4294901760, %v378_v42  ;;  %v392_v54 = vsub.f32 %v3648_v35, %v391_v43  ;;  %s155_s27 = sadd.s32 50, %s3661_s18  ;;  %p110_p5 = scmp.lt.s32.totalorder %s3513_s20, 3 }
  0x43   : > { %v3128_v57 = vpack.c.bf16 %v351_v47, %v344_v46  ;;  %v4498_v58 = vand.u32 4294901760, %v3673_v44  ;;  %v4497_v59 = vand.u32 4294901760, %v3675_v45  ;;  %vm3695_vm3 = vcmp.eq.s32.totalorder %v3571_v6, %v121_v19  ;;  %s195_s30 = sadd.s32 50, %s3677_s0 }
  0x44   : > { %vm159_vm4 = vcmp.eq.s32.totalorder %v3573_v7, 2  ;;  %v3131_v61 = vpack.c.bf16 %v365_v51, %v358_v48  ;;  %v386_v62 = vand.u32 4294901760, %v385_v49  ;;  %v4496_v63 = vand.u32 4294901760, %v3683_v50  ;;  %s171_s28 = sadd.s32 50, %s3701_s24  ;;  %s4533_s20 = smov (!%p110_p5, %s3513_s20), 3 }
  0x45   : > { %v137_v2 = vstv %s3628_s14  ;;  %3129 = vmatpush3.bf16.msra.mxu0 %v3128_v57  ;;  %v3710_v19 = vsub.f32 %v3673_v44, %v4498_v58  ;;  %v3715_v36 = vsub.f32 %v3675_v45, %v4497_v59  ;;  %v4495_v37 = vand.u32 4294901760, %v3690_v55  ;;  %s183_s29 = sadd.s32 50, %s3705_s25  ;;  %s112_s9 = scalar_lea.vmem %s4492_s2, %s4533_s20 }
  0x46   : > { %v3718_v38 = vand.u32 4294901760, %v241_v56  ;;  %3130 = vmatprep.subr.bf16.mxu0 %v3473_v0  ;;  %v3134_v40 = vpack.c.bf16 %v379_v53, %v372_v52  ;;  %v393_v41 = vand.u32 4294901760, %v392_v54  ;;  %v3725_v42 = vsub.f32 %v3683_v50, %v4496_v63 }
  0x47   : > { %v124_v46 = vstv %s123_s23  ;;  %vm175_vm5 = vcmp.eq.s32.totalorder %v3573_v7, 3  ;;  %v398_v47 = vand.u32 4294901760, %v3710_v19  ;;  %v405_v48 = vand.u32 4294901760, %v3715_v36 }
  0x48   : > { %v3733_v49 = vsub.f32 %v3690_v55, %v4495_v37  ;;  %vm3736_vm6 = vcmp.eq.s32.totalorder %v3571_v6, %v137_v2  ;;  %v412_v52 = vand.u32 4294901760, %v3725_v42  ;;  %vm125_vm7 = vcmp.eq.s32.totalorder %v3571_v6, %v124_v46 }
  0x49   : > { %v140_v53 = vstv %s139_s26  ;;  %v153_v54 = vstv %s3677_s0  ;;  %3132 = vmatpush3.bf16.msra.mxu0 %v3131_v61  ;;  %v399_v57 = vsub.f32 %v3710_v19, %v398_v47  ;;  %v406_v2 = vsub.f32 %v3715_v36, %v405_v48  ;;  %vm126_vm8 = vmor %vm3695_vm3, %vm125_vm7 }
  0x4a   : > { %v419_v37 = vand.u32 4294901760, %v3733_v49  ;;  %v3752_v63 = vsub.f32 %v241_v56, %v3718_v38  ;;  %3133 = vmatprep.subr.bf16.mxu0 %v3473_v0  ;;  %v3760_v61 = vsub.f32 %v3725_v42, %v412_v52  ;;  %vm130_vm9 = vmand %vm127_vm1, %vm126_vm8  ;;  %vm141_vm10 = vcmp.eq.s32.totalorder %v3571_v6, %v140_v53 }
  0x4b   : > { %vm3766_vm11 = vcmp.eq.s32.totalorder %v3571_v6, %v153_v54  ;;  %v156_v60 = vstv %s155_s27  ;;  %v400_v46 = vand.u32 4294901760, %v399_v57  ;;  %v407_v59 = vand.u32 4294901760, %v406_v2  ;;  %vm142_vm12 = vmor %vm3736_vm6, %vm141_vm10 }
  0x4c   : > { %v420_v58 = vsub.f32 %v3733_v49, %v419_v37  ;;  %vm4501_vm13 = vcmp.eq.s32.totalorder %v3573_v7, 4  ;;  %v3137_v53 = vpack.c.bf16 %v393_v41, %v386_v62  ;;  %v131_v54 = vsel %vm130_vm9, 1.0, %v3475_v1  ;;  %vm146_vm14 = vmand %vm143_vm2, %vm142_vm12 }
  0x4d   : > { %vm157_vm15 = vcmp.eq.s32.totalorder %v3571_v6, %v156_v60  ;;  %v169_v57 = vstv %s3705_s25  ;;  %3135 = vmatpush3.bf16.msra.mxu0 %v3134_v40  ;;  %v3140_v2 = vpack.c.bf16 %v407_v59, %v400_v46  ;;  %v414_v27 = vand.u32 4294901760, %v3760_v61 }
  0x4e   : > { %v426_v51 = vand.u32 4294901760, %v3752_v63  ;;  %v147_v23 = vsel %vm146_vm14, 1.0, %v3475_v1  ;;  %vm158_vm3 = vmor %vm3766_vm11, %vm157_vm15  ;;  %3136 = vmatprep.subr.bf16.mxu0 %v3473_v0  ;;  %vm170_vm7 = vcmp.eq.s32.totalorder %v3571_v6, %v169_v57  ;;  %v172_v59 = vstv %s171_s28 }
  0x4f   : > { %v148_v62 = vadd.f32 %v147_v23, %v131_v54  ;;  %vm162_vm6 = vmand %vm159_vm4, %vm158_vm3  ;;  %v181_v40 = vstv %s3701_s24  ;;  %v421_v41 = vand.u32 4294901760, %v420_v58  ;;  %vm173_vm8 = vcmp.eq.s32.totalorder %v3571_v6, %v172_v59 }
  0x50   : > { %v163_v61 = vsel %vm162_vm6, 1.0, %v3475_v1  ;;  %vm3797_vm9 = vcmp.eq.s32.totalorder %v3571_v6, %v181_v40  ;;  %vm174_vm10 = vmor %vm170_vm7, %vm173_vm8  ;;  %v184_v60 = vstv %s183_s29  ;;  %v193_v46 = vstv %s3661_s18 }
  0x51   : > { %v164_v23 = vadd.f32 %v163_v61, %v148_v62  ;;  %v196_v54 = vstv %s195_s30  ;;  %3138 = vmatpush3.bf16.msra.mxu0 %v3137_v53  ;;  %vm178_vm11 = vmand %vm175_vm5, %vm174_vm10  ;;  %vm185_vm12 = vcmp.eq.s32.totalorder %v3571_v6, %v184_v60  ;;  %vm3808_vm14 = vcmp.eq.s32.totalorder %v3571_v6, %v193_v46 }
  0x52   : > { %vm197_vm15 = vcmp.eq.s32.totalorder %v3571_v6, %v196_v54  ;;  %v205_v57 = vstv %s3639_s16  ;;  %3139 = vmatprep.subr.bf16.mxu0 %v3473_v0  ;;  %v179_v62 = vsel %vm178_vm11, 1.0, %v3475_v1  ;;  %vm186_vm3 = vmor %vm3797_vm9, %vm185_vm12  ;;  %vm199_vm6 = vcmp.eq.s32.totalorder %v3573_v7, 5 }
  0x53   : > { %v208_v53 = vstv %s207_s3  ;;  %v217_v59 = vstv %s3610_s13  ;;  %v180_v40 = vadd.f32 %v179_v62, %v164_v23  ;;  %vm190_vm7 = vmand %vm4501_vm13, %vm186_vm3  ;;  %vm3823_vm8 = vcmp.eq.s32.totalorder %v3571_v6, %v205_v57 }
  0x54   : > { %vm209_vm10 = vcmp.eq.s32.totalorder %v3571_v6, %v208_v53  ;;  %v220_v60 = vstv %s219_s4  ;;  %v427_v56 = vsub.f32 %v3752_v63, %v426_v51  ;;  %v191_v46 = vsel %vm190_vm7, 1.0, %v3475_v1  ;;  %vm198_vm9 = vmor %vm3808_vm14, %vm197_vm15 }
  0x55   : > { %vm211_vm11 = vcmp.eq.s32.totalorder %v3573_v7, 6  ;;  %3141 = vmatpush3.bf16.msra.mxu0 %v3140_v2  ;;  %v3143_v23 = vpack.c.bf16 %v421_v41, %v414_v27  ;;  %v192_v57 = vadd.f32 %v191_v46, %v180_v40  ;;  %vm202_vm12 = vmand %vm199_vm6, %vm198_vm9  ;;  %vm218_vm3 = vcmp.eq.s32.totalorder %v3571_v6, %v217_v59 }
  0x56   : > { %vm221_vm13 = vcmp.eq.s32.totalorder %v3571_v6, %v220_v60  ;;  %3142 = vmatprep.subr.bf16.mxu0 %v3473_v0  ;;  %v203_v62 = vsel %vm202_vm12, 1.0, %v3475_v1  ;;  %vm210_vm7 = vmor %vm3823_vm8, %vm209_vm10  ;;  %vm223_vm14 = vcmp.eq.s32.totalorder %v3573_v7, 7  ;;  %v3850_v27 = vpack.c.bf16 %v255_v9, %v252_v8 }
  0x57   : > { %v204_v2 = vadd.f32 %v203_v62, %v192_v57  ;;  %vm214_vm15 = vmand %vm211_vm11, %vm210_vm7  ;;  %v428_v41 = vand.u32 4294901760, %v427_v56  ;;  %v3859_v58 = vpack.c.bf16 %v349_v29, %v342_v28  ;;  %v3865_v3 = vpack.c.bf16 %v363_v32, %v356_v30 }
  0x58   : > { %v215_v54 = vsel %vm214_vm15, 1.0, %v3475_v1  ;;  %vm222_vm9 = vmor %vm218_vm3, %vm221_vm13  ;;  %3111 = vmatpush3.bf16.msra.mxu1 %v3850_v27  ;;  %v3874_v8 = vpack.c.bf16 %v377_v34, %v370_v33  ;;  %v3880_v9 = vpack.c.bf16 %v391_v43, %v384_v39  ;;  %v3886_v28 = vpack.c.bf16 %v405_v48, %v398_v47 }
  0x59   : > { %3144 = vmatpush3.bf16.msra.mxu0 %v3143_v23  ;;  %v216_v4 = vadd.f32 %v215_v54, %v204_v2  ;;  %vm226_vm8 = vmand %vm223_vm14, %vm222_vm9  ;;  %vm247_vm13 = vcmask 850944   ;;  %v3894_v30 = vpack.c.bf16 %v261_v14, %v258_v11  ;;  %v3900_v32 = vpack.c.bf16 %v419_v37, %v412_v52  ;;  %3112 = vmatprep.subr.bf16.mxu1 %v3473_v0  ;;  %v2607_v52 = vld [vmem:[#allocation4 + $0x88] ss:$0 sm:$0xff] }
  0x5a   : > { %2834 = vmatprep.subr.mxu0 %v3475_v1  ;;  %v227_v29 = vsel %vm226_vm8, 1.0, %v3475_v1  ;;  %v3146_v5 = vpack.c.bf16 %v3602_v21, %v3597_v20  ;;  %v3914_v11 = vpack.c.bf16 %v267_v16, %v264_v15  ;;  %v3149_v14 = vpack.c.bf16 %v3615_v24, %v3607_v22 }
  0x5b   : > { %v228_v33 = vadd.f32 %v227_v29, %v216_v4  ;;  %v4521_v20 = vand.u32 4294901760, %v3588_v17  ;;  %v4522_v12 = vand.u32 4294901760, %v3590_v18  ;;  %v3152_v15 = vpack.c.bf16 %v3625_v26, %v3620_v25 }
  0x5c   : > { %3114 = vmatpush3.bf16.msra.mxu1 %v3894_v30  ;;  %v4523_v17 = vand.u32 4294901760, %v3673_v44  ;;  %v4524_v18 = vand.u32 4294901760, %v3675_v45  ;;  %v3155_v24 = vpack.c.bf16 %v3648_v35, %v3637_v31  ;;  %v4525_v25 = vand.u32 4294901760, %v3683_v50  ;;  %v853_v44 = vld [vmem:[#allocation4 + $0x68] sm:$0xff]  ;;  %v854_v45 = vld [vmem:[#allocation4 + $0x70] sm:$0xff]  ;;  %v855_v50 = vld [vmem:[#allocation4 + $0x78] sm:$0xff] }
  0x5d   : > { %2835 = vmatpush3.msra.mxu0 %v428_v41  ;;  %v249_v34 = vsel %vm247_vm13, %v228_v33, 0  ;;  %3115 = vmatprep.subr.bf16.mxu1 %v3473_v0  ;;  %v3927_v13 = vpack.c.bf16 %v4522_v12, %v4521_v20  ;;  %v4526_v26 = vand.u32 4294901760, %v3690_v55  ;;  %v3158_v37 = vpack.c.bf16 %v3715_v36, %v3710_v19  ;;  %v856_v55 = vld [vmem:[#allocation4 + $0x80] sm:$0xff]  ;;  %v857_v36 = vld [vmem:[#allocation4 + $0x89] sm:$0x1] }
  0x5e   : > { %3145 = vmatprep.subr.bf16.mxu0 %v3473_v0  ;;  %v3908_v10 = vand.u32 4294901760, %v249_v34  ;;  %v3940_v21 = vpack.c.bf16 %v4524_v18, %v4523_v17  ;;  %v3958_v35 = vpack.c.bf16 %v854_v45, %v853_v44  ;;  %v3161_v47 = vpack.c.bf16 %v3733_v49, %v3725_v42 }
  0x5f   : > { %v3951_v39 = vpack.c.bf16 %v4526_v26, %v4525_v25  ;;  %v3966_v19 = vpack.c.bf16 %v856_v55, %v855_v50  ;;  %vm859_vm10 = vcmask 261120   ;;  %vm961_vm12 = vcmp.lt.s32.totalorder %v3571_v6, 16 }
  0x60   : > { %2837 = vmatmul.mubr.f32.vlgmr.msra.gmra.mrb[0].mxu0 %v3908_v10  ;;  %3117 = vmatpush3.bf16.msra.mxu1 %v3914_v11  ;;  %v330_v16 = vsub.f32 %v249_v34, %v3908_v10  ;;  %vm962_vm3 = vmand %vm127_vm1, %vm961_vm12  ;;  %vm972_vm7 = vcmp.ge.s32.totalorder %v3571_v6, 16 }
  0x61   : > { %3147 = vmatpush3.bf16.msra.mxu0 %v3146_v5  ;;  %2865 = vmatprep.mubr.msk.f32.mxu0 %vm4502_vm0, %v3475_v1  ;;  %vm973_vm15 = vmand %vm223_vm14, %vm972_vm7 }
  0x62   : > { %3148 = vmatprep.subr.bf16.mxu0 %v3473_v0  ;;  %3118 = vmatprep.subr.bf16.mxu1 %v3473_v0  ;;  %v331_v22 = vand.u32 4294901760, %v330_v16  ;;  %vm1077_vm9 = vmand %vm143_vm2, %vm961_vm12 }
  0x63   : > { %vm1087_vm8 = vmand %vm211_vm11, %vm972_vm7 }
  0x64   : > { %3120 = vmatpush3.bf16.msra.mxu1 %v3927_v13  ;;  %v332_v43 = vsub.f32 %v330_v16, %v331_v22  ;;  %vm1190_vm13 = vmand %vm159_vm4, %vm961_vm12 }
  0x65   : > { %3150 = vmatpush3.bf16.msra.mxu0 %v3149_v14  ;;  %3121 = vmatprep.subr.bf16.mxu1 %v3473_v0 }
  0x66   : > { %3151 = vmatprep.subr.bf16.mxu0 %v3473_v0  ;;  %v333_v31 = vand.u32 4294901760, %v332_v43 }
  0x68   : > { %3123 = vmatpush3.bf16.msra.mxu1 %v3940_v21 }
  0x69   : > { %3153 = vmatpush3.bf16.msra.mxu0 %v3152_v15  ;;  %3124 = vmatprep.subr.bf16.mxu1 %v3473_v0 }
  0x6a   : > { %3154 = vmatprep.subr.bf16.mxu0 %v3473_v0 }
  0x6c   : > { %3126 = vmatpush3.bf16.msra.mxu1 %v3951_v39 }
  0x6d   : > { %3156 = vmatpush3.bf16.msra.mxu0 %v3155_v24  ;;  %2805 = vmatprep.subr.mxu1 %v3475_v1 }
  0x6e   : > { %3157 = vmatprep.subr.bf16.mxu0 %v3473_v0 }
  0x70   : > { %2806 = vmatpush3.msra.mxu1 %v3718_v38 }
  0x71   : > { %3159 = vmatpush3.bf16.msra.mxu0 %v3158_v37  ;;  %3217 = vmatprep.subr.bf16.mxu1 %v3473_v0 }
  0x72   : > { %3160 = vmatprep.subr.bf16.mxu0 %v3473_v0  ;;  %2808 = vmatmul.mubr.f32.vlgmr.msra.gmra.mrb[0].mxu1 %v333_v31 }
  0x73   : > { %3219 = vmatpush3.bf16.msra.mxu1 %v3958_v35  ;;  %2963 = vmatprep.mubr.msk.f32.mxu1 %vm4502_vm0, %v3475_v1 }
  0x74   : > { %3220 = vmatprep.subr.bf16.mxu1 %v3473_v0 }
  0x75   : > { %3162 = vmatpush3.bf16.msra.mxu0 %v3161_v47 }
  0x76   : > { %2863 = vmatprep.subr.mxu0 %v3475_v1 }
  0x77   : > { %3222 = vmatpush3.bf16.msra.mxu1 %v3966_v19 }
  0x78   : > { %3223 = vmatprep.subr.bf16.mxu1 %v3473_v0 }
  0x79   : > { %2864 = vmatpush3.msra.mxu0 %v3752_v63 }
  0x7a   : > { %3163 = vmatprep.subr.bf16.mxu0 %v3473_v0  ;;  %2866 = vmatmul.mubr.f32.vlgmr.msra.gmra.mrb[0].mxu0 %v330_v16 }
  0x7b   : > { %3165 = vmatpush3.bf16.msra.mxu0 %v3850_v27  ;;  %2894 = vmatprep.mubr.msk.f32.mxu0 %vm4502_vm0, %v3475_v1 }
  0x7c   : > { %3166 = vmatprep.subr.bf16.mxu0 %v3473_v0  ;;  %2964 = vmatmul.mubr.msk.f32.vlgmr.msra.gmra.mrb[2].mxu1 %vm859_vm10, %v857_v36 }
  0x7d   : > { %3225 = vmatpush3.bf16.msra.mxu1 %v3958_v35  ;;  %2974 = vmatprep.mubr.msk.f32.mxu1 %vm4502_vm0, %v3475_v1 }
  0x7e   : > { %3226 = vmatprep.subr.bf16.mxu1 %v3473_v0 }
  0x7f   : > { %3168 = vmatpush3.bf16.msra.mxu0 %v3894_v30 }
  0x80   : > { %3169 = vmatprep.subr.bf16.mxu0 %v3473_v0 }
  0x81   : > { %3228 = vmatpush3.bf16.msra.mxu1 %v3966_v19 }
  0x82   : > { %3229 = vmatprep.subr.bf16.mxu1 %v3473_v0 }
  0x83   : > { %3171 = vmatpush3.bf16.msra.mxu0 %v3914_v11 }
  0x84   : > { %3172 = vmatprep.subr.bf16.mxu0 %v3473_v0 }
  0x87   : > { %3174 = vmatpush3.bf16.msra.mxu0 %v3927_v13 }
  0x88   : > { %3175 = vmatprep.subr.bf16.mxu0 %v3473_v0 }
  0x8b   : > { %3177 = vmatpush3.bf16.msra.mxu0 %v3940_v21 }
  0x8c   : > { %3178 = vmatprep.subr.bf16.mxu0 %v3473_v0 }
  0x8f   : > { %3180 = vmatpush3.bf16.msra.mxu0 %v3951_v39 }
  0x90   : > { %2892 = vmatprep.subr.mxu0 %v3475_v1 }
  0x93   : > { %2893 = vmatpush3.msra.mxu0 %v3718_v38 }
  0x94   : > { %3181 = vmatprep.subr.bf16.mxu0 %v3473_v0  ;;  %2895 = vmatmul.mubr.f32.vlgmr.msra.gmra.mrb[0].mxu0 %v331_v22 }
  0x95   : > { %3183 = vmatpush3.bf16.msra.mxu0 %v3859_v58  ;;  %2923 = vmatprep.mubr.msk.f32.mxu0 %vm4502_vm0, %v3475_v1 }
  0x96   : > { %3184 = vmatprep.subr.bf16.mxu0 %v3473_v0 }
  0x99   : > { %3186 = vmatpush3.bf16.msra.mxu0 %v3865_v3 }
  0x9a   : > { %3187 = vmatprep.subr.bf16.mxu0 %v3473_v0 }
  0x9d   : > { %3189 = vmatpush3.bf16.msra.mxu0 %v3874_v8 }
  0x9e   : > { %3190 = vmatprep.subr.bf16.mxu0 %v3473_v0 }
  0xa1   : > { %3192 = vmatpush3.bf16.msra.mxu0 %v3880_v9 }
  0xa2   : > { %3193 = vmatprep.subr.bf16.mxu0 %v3473_v0 }
  0xa5   : > { %3195 = vmatpush3.bf16.msra.mxu0 %v3886_v28 }
  0xa6   : > { %3196 = vmatprep.subr.bf16.mxu0 %v3473_v0 }
  0xa9   : > { %3198 = vmatpush3.bf16.msra.mxu0 %v3900_v32 }
  0xaa   : > { %2921 = vmatprep.subr.mxu0 %v3475_v1 }
  0xad   : > { %2922 = vmatpush3.msra.mxu0 %v426_v51 }
  0xae   : > { %3199 = vmatprep.subr.bf16.mxu0 %v3473_v0  ;;  %2924 = vmatmul.mubr.f32.vlgmr.msra.gmra.mrb[0].mxu0 %v3908_v10 }
  0xaf   : > { %3201 = vmatpush3.bf16.msra.mxu0 %v3850_v27  ;;  %2952 = vmatprep.mubr.msk.f32.mxu0 %vm4502_vm0, %v3475_v1 }
  0xb0   : > { %3202 = vmatprep.subr.bf16.mxu0 %v3473_v0 }
  0xb3   : > { %3204 = vmatpush3.bf16.msra.mxu0 %v3894_v30 }
  0xb4   : > { %3205 = vmatprep.subr.bf16.mxu0 %v3473_v0 }
  0xb7   : > { %3207 = vmatpush3.bf16.msra.mxu0 %v3914_v11 }
  0xb8   : > { %3208 = vmatprep.subr.bf16.mxu0 %v3473_v0 }
  0xbb   : > { %3210 = vmatpush3.bf16.msra.mxu0 %v3927_v13 }
  0xbc   : > { %3211 = vmatprep.subr.bf16.mxu0 %v3473_v0 }
  0xbf   : > { %3213 = vmatpush3.bf16.msra.mxu0 %v3940_v21 }
  0xc0   : > { %3214 = vmatprep.subr.bf16.mxu0 %v3473_v0 }
  0xc3   : > { %3216 = vmatpush3.bf16.msra.mxu0 %v3951_v39 }
  0xc4   : > { %2950 = vmatprep.subr.mxu0 %v3475_v1 }
  0xc7   : > { %2951 = vmatpush3.msra.mxu0 %v3718_v38  ;;  %v858_v38 = vld [vmem:[#allocation4 + $0x8a] sm:$0x1] }
  0xc8   : > { %2953 = vmatmul.mubr.f32.vlgmr.msra.gmra.mrb[0].mxu0 %v3908_v10 }
 0x145   : > { %v335_v63 = vpop.f32.mrb[0].mxu1 }
 0x146   : > { %v2809_v42 = vpop.f32.mrb[1].mxu1  ;;  %v336_v51 = vadd.f32 %v2607_v52, %v335_v63 }
 0x14f   : > { %v929_v48 = vpop.f32.mrb[2].mxu1 }
 0x150   : > { %v2965_v49 = vpop.f32.mrb[3].mxu1 }
 0x19b   : > { %v849_v53 = vpop.f32.mrb[0].mxu0 }
 0x19c   : > { %v4033_v59 = vadd.f32 %v849_v53, %v336_v51  ;;  %v2954_v40 = vpop.f32.mrb[1].mxu0 }
 0x19e   : > { %v930_v61 = vadd.f32 %v4033_v59, %v929_v48  ;;  %v979_v28 = vrot.slane %v4033_v59, 1  ;;  %v1092_v22 = vrot.slane %v4033_v59, 2  ;;  %v1205_v52 = vrot.slane %v4033_v59, 3 }
 0x1a0   : > { %3353 = vtanh.f32 %v930_v61  ;;  %v2609_v56 = vmul.f32 -1.442695, %v930_v61 }
 0x1a2   : > { %3355 = vpow2.f32 %v2609_v56 }
 0x1aa   : > { %v3354_v60 = vpop.eup %3353 }
 0x1ab   : > { %946 = vrot.lane.b32.xlu0 %v3354_v60, %s3476_s5 }
 0x1ac   : > { %v3356_v46 = vpop.eup %3355 }
 0x1ad   : > { %v936_v23 = vadd.f32 1.0, %v3356_v46 }
 0x1af   : > { %941 = vrot.lane.b32.xlu0 %v858_v38, %s3476_s5  ;;  %3357 = vrcp.f32 %v936_v23 }
 0x1b9   : > { %v3358_v57 = vpop.eup %3357 }
 0x21d   : > { %v947_v62 = vpop.permute.xlu0 %946 }
 0x21e   : > { %v949_v27 = vmul.f32 %v3358_v57, %v947_v62 }
 0x220   : > { %951 = vrot.lane.b32.xlu1 %v949_v27, %s3476_s5 }
 0x221   : > { %v942_v2 = vpop.permute.xlu0 %941 }
 0x222   : > { %v944_v41 = vmul.f32 %v3358_v57, %v942_v2 }
 0x292   : > { %v952_v54 = vpop.permute.xlu1 %951 }
 0x293   : > { %v954_v58 = vadd.f32 %v952_v54, %v944_v41 }
 0x295   : > { %3359 = vtanh.f32 %v954_v58 }
 0x29f   : > { %v3360_v3 = vpop.eup %3359 }
 0x2a0   : > { %957 = vrot.lane.b32.xlu1 %v3360_v3, %s3476_s5 }
 0x312   : > { %v958_v4 = vpop.permute.xlu1 %957 }
 0x313   : > { %v4040_v8 = vmul.f32 %v3358_v57, %v958_v4  ;;  %v1318_v4 = vrot.slane %v4033_v59, 4 }
 0x315   : > { %976 = vrot.lane.b32.xlu0 %v4040_v8, %s3477_s6 }
 0x387   : > { %v977_v9 = vpop.permute.xlu0 %976 }
 0x388   : > { %2975 = vmatmul.mubr.msk.f32.vlgmr.msra.gmra.mrb[4].mxu1 %vm859_vm10, %v977_v9 }
 0x389   : > { %3231 = vmatpush3.bf16.msra.mxu1 %v3958_v35  ;;  %2985 = vmatprep.mubr.msk.f32.mxu1 %vm4502_vm0, %v3475_v1 }
 0x38a   : > { %3232 = vmatprep.subr.bf16.mxu1 %v3473_v0 }
 0x38d   : > { %3234 = vmatpush3.bf16.msra.mxu1 %v3966_v19 }
 0x38e   : > { %3235 = vmatprep.subr.bf16.mxu1 %v3473_v0 }
 0x45b   : > { %v1049_v29 = vpop.f32.mrb[4].mxu1 }
 0x45c   : > { %v1050_v30 = vadd.f32 %v1049_v29, %v979_v28  ;;  %v2976_v32 = vpop.f32.mrb[5].mxu1 }
 0x45e   : > { %3361 = vtanh.f32 %v1050_v30  ;;  %v2611_v34 = vmul.f32 -1.442695, %v1050_v30 }
 0x460   : > { %3363 = vpow2.f32 %v2611_v34 }
 0x468   : > { %v3362_v33 = vpop.eup %3361 }
 0x469   : > { %1062 = vrot.lane.b32.xlu1 %v3362_v33, %s3476_s5 }
 0x46a   : > { %v3364_v5 = vpop.eup %3363 }
 0x46b   : > { %v1056_v10 = vadd.f32 1.0, %v3364_v5 }
 0x46d   : > { %3365 = vrcp.f32 %v1056_v10 }
 0x477   : > { %v3366_v11 = vpop.eup %3365 }
 0x478   : > { %v1060_v12 = vmul.f32 %v3366_v11, %v954_v58 }
 0x4db   : > { %v1063_v14 = vpop.permute.xlu1 %1062 }
 0x4dc   : > { %v1065_v20 = vmul.f32 %v3366_v11, %v1063_v14 }
 0x4de   : > { %1067 = vrot.lane.b32.xlu0 %v1065_v20, %s3476_s5 }
 0x550   : > { %v1068_v13 = vpop.permute.xlu0 %1067 }
 0x551   : > { %v1070_v15 = vadd.f32 %v1068_v13, %v1060_v12 }
 0x553   : > { %3367 = vtanh.f32 %v1070_v15 }
 0x55d   : > { %v3368_v16 = vpop.eup %3367 }
 0x55e   : > { %1073 = vrot.lane.b32.xlu1 %v3368_v16, %s3476_s5 }
 0x5d0   : > { %v1074_v17 = vpop.permute.xlu1 %1073 }
 0x5d1   : > { %v4055_v18 = vmul.f32 %v3366_v11, %v1074_v17 }
 0x5d3   : > { %1090 = vrot.lane.b32.xlu0 %v4055_v18, %s3477_s6 }
 0x645   : > { %v1091_v21 = vpop.permute.xlu0 %1090 }
 0x646   : > { %2986 = vmatmul.mubr.msk.f32.vlgmr.msra.gmra.mrb[6].mxu1 %vm859_vm10, %v1091_v21  ;;  %v1431_v21 = vrot.slane %v4033_v59, 5 }
 0x647   : > { %3237 = vmatpush3.bf16.msra.mxu1 %v3958_v35  ;;  %2996 = vmatprep.mubr.msk.f32.mxu1 %vm4502_vm0, %v3475_v1 }
 0x648   : > { %3238 = vmatprep.subr.bf16.mxu1 %v3473_v0 }
 0x64b   : > { %3240 = vmatpush3.bf16.msra.mxu1 %v3966_v19 }
 0x64c   : > { %3241 = vmatprep.subr.bf16.mxu1 %v3473_v0 }
 0x719   : > { %v1162_v24 = vpop.f32.mrb[6].mxu1 }
 0x71a   : > { %v1163_v25 = vadd.f32 %v1162_v24, %v1092_v22  ;;  %v2987_v26 = vpop.f32.mrb[7].mxu1 }
 0x71c   : > { %3369 = vtanh.f32 %v1163_v25  ;;  %v2613_v43 = vmul.f32 -1.442695, %v1163_v25 }
 0x71e   : > { %3371 = vpow2.f32 %v2613_v43 }
 0x726   : > { %v3370_v39 = vpop.eup %3369 }
 0x727   : > { %1175 = vrot.lane.b32.xlu1 %v3370_v39, %s3476_s5 }
 0x728   : > { %v3372_v44 = vpop.eup %3371 }
 0x729   : > { %v1169_v45 = vadd.f32 1.0, %v3372_v44 }
 0x72b   : > { %3373 = vrcp.f32 %v1169_v45 }
 0x735   : > { %v3374_v37 = vpop.eup %3373 }
 0x736   : > { %v1173_v55 = vmul.f32 %v3374_v37, %v1070_v15 }
 0x799   : > { %v1176_v31 = vpop.permute.xlu1 %1175 }
 0x79a   : > { %v1178_v50 = vmul.f32 %v3374_v37, %v1176_v31 }
 0x79c   : > { %1180 = vrot.lane.b32.xlu0 %v1178_v50, %s3476_s5 }
 0x80e   : > { %v1181_v47 = vpop.permute.xlu0 %1180 }
 0x80f   : > { %v1183_v36 = vadd.f32 %v1181_v47, %v1173_v55 }
 0x811   : > { %3375 = vtanh.f32 %v1183_v36 }
 0x81b   : > { %v3376_v63 = vpop.eup %3375 }
 0x81c   : > { %1186 = vrot.lane.b32.xlu1 %v3376_v63, %s3476_s5 }
 0x88e   : > { %v1187_v42 = vpop.permute.xlu1 %1186 }
 0x88f   : > { %v4070_v48 = vmul.f32 %v3374_v37, %v1187_v42 }
 0x891   : > { %1203 = vrot.lane.b32.xlu0 %v4070_v48, %s3477_s6 }
 0x903   : > { %v1204_v49 = vpop.permute.xlu0 %1203 }
 0x904   : > { %2997 = vmatmul.mubr.msk.f32.vlgmr.msra.gmra.mrb[8].mxu1 %vm859_vm10, %v1204_v49 }
 0x905   : > { %3243 = vmatpush3.bf16.msra.mxu1 %v3958_v35  ;;  %3007 = vmatprep.mubr.msk.f32.mxu1 %vm4502_vm0, %v3475_v1 }
 0x906   : > { %3244 = vmatprep.subr.bf16.mxu1 %v3473_v0 }
 0x909   : > { %3246 = vmatpush3.bf16.msra.mxu1 %v3966_v19 }
 0x90a   : > { %3247 = vmatprep.subr.bf16.mxu1 %v3473_v0 }
 0x9d7   : > { %v1275_v51 = vpop.f32.mrb[8].mxu1 }
 0x9d8   : > { %v1276_v53 = vadd.f32 %v1275_v51, %v1205_v52  ;;  %v2998_v40 = vpop.f32.mrb[9].mxu1  ;;  %v1544_v52 = vrot.slane %v4033_v59, 6 }
 0x9da   : > { %3377 = vtanh.f32 %v1276_v53  ;;  %v2615_v60 = vmul.f32 -1.442695, %v1276_v53 }
 0x9dc   : > { %3379 = vpow2.f32 %v2615_v60 }
 0x9e4   : > { %v3378_v61 = vpop.eup %3377 }
 0x9e5   : > { %1288 = vrot.lane.b32.xlu1 %v3378_v61, %s3476_s5 }
 0x9e6   : > { %v3380_v38 = vpop.eup %3379 }
 0x9e7   : > { %v1282_v56 = vadd.f32 1.0, %v3380_v38 }
 0x9e9   : > { %3381 = vrcp.f32 %v1282_v56 }
 0x9f3   : > { %v3382_v46 = vpop.eup %3381 }
 0x9f4   : > { %v1286_v62 = vmul.f32 %v3382_v46, %v1183_v36 }
 0xa57   : > { %v1289_v23 = vpop.permute.xlu1 %1288 }
 0xa58   : > { %v1291_v57 = vmul.f32 %v3382_v46, %v1289_v23 }
 0xa5a   : > { %1293 = vrot.lane.b32.xlu0 %v1291_v57, %s3476_s5 }
 0xacc   : > { %v1294_v27 = vpop.permute.xlu0 %1293 }
 0xacd   : > { %v1296_v2 = vadd.f32 %v1294_v27, %v1286_v62 }
 0xacf   : > { %3383 = vtanh.f32 %v1296_v2 }
 0xad9   : > { %v3384_v41 = vpop.eup %3383 }
 0xada   : > { %1299 = vrot.lane.b32.xlu1 %v3384_v41, %s3476_s5 }
 0xb4c   : > { %v1300_v54 = vpop.permute.xlu1 %1299 }
 0xb4d   : > { %v4085_v58 = vmul.f32 %v3382_v46, %v1300_v54 }
 0xb4f   : > { %1316 = vrot.lane.b32.xlu0 %v4085_v58, %s3477_s6 }
 0xbc1   : > { %v1317_v3 = vpop.permute.xlu0 %1316 }
 0xbc2   : > { %3008 = vmatmul.mubr.msk.f32.vlgmr.msra.gmra.mrb[10].mxu1 %vm859_vm10, %v1317_v3  ;;  %v1657_v3 = vrot.slane %v4033_v59, 7 }
 0xbc3   : > { %3249 = vmatpush3.bf16.msra.mxu1 %v3958_v35  ;;  %3018 = vmatprep.mubr.msk.f32.mxu1 %vm4502_vm0, %v3475_v1 }
 0xbc4   : > { %3250 = vmatprep.subr.bf16.mxu1 %v3473_v0 }
 0xbc7   : > { %3252 = vmatpush3.bf16.msra.mxu1 %v3966_v19 }
 0xbc8   : > { %3253 = vmatprep.subr.bf16.mxu1 %v3473_v0 }
 0xc95   : > { %v1388_v9 = vpop.f32.mrb[10].mxu1 }
 0xc96   : > { %v1389_v28 = vadd.f32 %v1388_v9, %v1318_v4  ;;  %v3009_v29 = vpop.f32.mrb[11].mxu1 }
 0xc98   : > { %3385 = vtanh.f32 %v1389_v28  ;;  %v2617_v32 = vmul.f32 -1.442695, %v1389_v28 }
 0xc9a   : > { %3387 = vpow2.f32 %v2617_v32 }
 0xca2   : > { %v3386_v30 = vpop.eup %3385 }
 0xca3   : > { %1401 = vrot.lane.b32.xlu1 %v3386_v30, %s3476_s5 }
 0xca4   : > { %v3388_v33 = vpop.eup %3387 }
 0xca5   : > { %v1395_v34 = vadd.f32 1.0, %v3388_v33 }
 0xca7   : > { %3389 = vrcp.f32 %v1395_v34 }
 0xcb1   : > { %v3390_v5 = vpop.eup %3389 }
 0xcb2   : > { %v1399_v14 = vmul.f32 %v3390_v5, %v1296_v2 }
 0xd15   : > { %v1402_v10 = vpop.permute.xlu1 %1401 }
 0xd16   : > { %v1404_v11 = vmul.f32 %v3390_v5, %v1402_v10  ;;  %v4137_v10 = vsub.s32 0, %v3573_v7 }
 0xd18   : > { %1406 = vrot.lane.b32.xlu0 %v1404_v11, %s3476_s5  ;;  %v966_v59 = vrot.slane %v4040_v8, %v4137_v10 }
 0xd8a   : > { %v1407_v20 = vpop.permute.xlu0 %1406 }
 0xd8b   : > { %v1409_v12 = vadd.f32 %v1407_v20, %v1399_v14  ;;  %v1194_v14 = vrot.slane %v4070_v48, %v4137_v10  ;;  %v1081_v48 = vrot.slane %v4055_v18, %v4137_v10 }
 0xd8d   : > { %3391 = vtanh.f32 %v1409_v12 }
 0xd97   : > { %v3392_v13 = vpop.eup %3391 }
 0xd98   : > { %1412 = vrot.lane.b32.xlu1 %v3392_v13, %s3476_s5 }
 0xe0a   : > { %v1413_v15 = vpop.permute.xlu1 %1412 }
 0xe0b   : > { %v4100_v16 = vmul.f32 %v3390_v5, %v1413_v15 }
 0xe0d   : > { %1429 = vrot.lane.b32.xlu0 %v4100_v16, %s3477_s6  ;;  %v1420_v20 = vrot.slane %v4100_v16, %v4137_v10  ;;  %v1307_v16 = vrot.slane %v4085_v58, %v4137_v10 }
 0xe7f   : > { %v1430_v17 = vpop.permute.xlu0 %1429 }
 0xe80   : > { %3019 = vmatmul.mubr.msk.f32.vlgmr.msra.gmra.mrb[12].mxu1 %vm859_vm10, %v1430_v17 }
 0xe81   : > { %3255 = vmatpush3.bf16.msra.mxu1 %v3958_v35  ;;  %3029 = vmatprep.mubr.msk.f32.mxu1 %vm4502_vm0, %v3475_v1 }
 0xe82   : > { %3256 = vmatprep.subr.bf16.mxu1 %v3473_v0 }
 0xe85   : > { %3258 = vmatpush3.bf16.msra.mxu1 %v3966_v19 }
 0xe86   : > { %3259 = vmatprep.subr.bf16.mxu1 %v3473_v0 }
 0xf53   : > { %v1501_v22 = vpop.f32.mrb[12].mxu1 }
 0xf54   : > { %v1502_v24 = vadd.f32 %v1501_v22, %v1431_v21  ;;  %v3020_v25 = vpop.f32.mrb[13].mxu1  ;;  %v1767_v22 = vld [vmem:[#allocation4 + $0x90] sm:$0xff] }
 0xf55   : > { %v1780_v25 = vand.u32 4294901760, %v1767_v22 }
 0xf56   : > { %3393 = vtanh.f32 %v1502_v24  ;;  %v2619_v39 = vmul.f32 -1.442695, %v1502_v24  ;;  %v1768_v24 = vld [vmem:[#allocation4 + $0x98] sm:$0xff] }
 0xf58   : > { %3395 = vpow2.f32 %v2619_v39 }
 0xf60   : > { %v3394_v26 = vpop.eup %3393 }
 0xf61   : > { %1514 = vrot.lane.b32.xlu1 %v3394_v26, %s3476_s5  ;;  %v1783_v26 = vand.u32 4294901760, %v1768_v24 }
 0xf62   : > { %v3396_v43 = vpop.eup %3395 }
 0xf63   : > { %v1508_v44 = vadd.f32 1.0, %v3396_v43  ;;  %v4161_v39 = vpack.c.bf16 %v1783_v26, %v1780_v25  ;;  %v4163_v43 = vsub.f32 %v1767_v22, %v1780_v25  ;;  %v4165_v18 = vsub.f32 %v1768_v24, %v1783_v26 }
 0xf65   : > { %3397 = vrcp.f32 %v1508_v44  ;;  %v1769_v44 = vld [vmem:[#allocation4 + $0xa0] sm:$0xff] }
 0xf66   : > { %v1786_v58 = vand.u32 4294901760, %v1769_v44 }
 0xf6f   : > { %v3398_v45 = vpop.eup %3397 }
 0xf70   : > { %v1512_v50 = vmul.f32 %v3398_v45, %v1409_v12 }
 0xfd3   : > { %v1515_v37 = vpop.permute.xlu1 %1514 }
 0xfd4   : > { %v1517_v31 = vmul.f32 %v3398_v45, %v1515_v37 }
 0xfd6   : > { %1519 = vrot.lane.b32.xlu0 %v1517_v31, %s3476_s5  ;;  %v1861_v31 = vand.u32 4294901760, %v4163_v43 }
0x1048   : > { %v1520_v55 = vpop.permute.xlu0 %1519 }
0x1049   : > { %v1522_v47 = vadd.f32 %v1520_v55, %v1512_v50  ;;  %v1868_v50 = vand.u32 4294901760, %v4165_v18 }
0x104b   : > { %3399 = vtanh.f32 %v1522_v47 }
0x1055   : > { %v3400_v36 = vpop.eup %3399 }
0x1056   : > { %1525 = vrot.lane.b32.xlu1 %v3400_v36, %s3476_s5 }
0x10c8   : > { %v1526_v63 = vpop.permute.xlu1 %1525 }
0x10c9   : > { %v4115_v42 = vmul.f32 %v3398_v45, %v1526_v63  ;;  %v1770_v45 = vld [vmem:[#allocation4 + $0xa8] sm:$0xff]  ;;  %v4173_v63 = vsub.f32 %v1769_v44, %v1786_v58  ;;  %v4288_v44 = vcvt.s32.f32 %v3573_v7 }
0x10ca   : > { %v1789_v37 = vand.u32 4294901760, %v1770_v45 }
0x10cb   : > { %1542 = vrot.lane.b32.xlu0 %v4115_v42, %s3477_s6  ;;  %v1533_v21 = vrot.slane %v4115_v42, %v4137_v10 }
0x10cc   : > { %v4171_v36 = vpack.c.bf16 %v1789_v37, %v1786_v58  ;;  %v4175_v42 = vsub.f32 %v1770_v45, %v1789_v37  ;;  %v4291_v45 = vld [vmem:[#allocation4 + $0xb0] sm:$0x1f]  ;;  %v3478_v58 = vmov -10000.0  }
0x113d   : > { %v1543_v49 = vpop.permute.xlu0 %1542 }
0x113e   : > { %3030 = vmatmul.mubr.msk.f32.vlgmr.msra.gmra.mrb[14].mxu1 %vm859_vm10, %v1543_v49  ;;  %v1862_v49 = vsub.f32 %v4163_v43, %v1861_v31 }
0x113f   : > { %3261 = vmatpush3.bf16.msra.mxu1 %v3958_v35  ;;  %3040 = vmatprep.mubr.msk.f32.mxu1 %vm4502_vm0, %v3475_v1 }
0x1140   : > { %3262 = vmatprep.subr.bf16.mxu1 %v3473_v0 }
0x1143   : > { %3264 = vmatpush3.bf16.msra.mxu1 %v3966_v19 }
0x1144   : > { %3265 = vmatprep.subr.bf16.mxu1 %v3473_v0 }
0x1211   : > { %v1614_v51 = vpop.f32.mrb[14].mxu1 }
0x1212   : > { %v1615_v53 = vadd.f32 %v1614_v51, %v1544_v52  ;;  %v3031_v40 = vpop.f32.mrb[15].mxu1  ;;  %v1869_v52 = vsub.f32 %v4165_v18, %v1868_v50 }
0x1213   : > { %v1882_v40 = vand.u32 4294901760, %v4175_v42 }
0x1214   : > { %3401 = vtanh.f32 %v1615_v53  ;;  %v2621_v60 = vmul.f32 -1.442695, %v1615_v53  ;;  %v1875_v53 = vand.u32 4294901760, %v4173_v63 }
0x1216   : > { %3403 = vpow2.f32 %v2621_v60  ;;  %v1870_v60 = vand.u32 4294901760, %v1869_v52 }
0x121e   : > { %v3402_v61 = vpop.eup %3401 }
0x121f   : > { %1627 = vrot.lane.b32.xlu1 %v3402_v61, %s3476_s5  ;;  %v1863_v61 = vand.u32 4294901760, %v1862_v49 }
0x1220   : > { %v3404_v35 = vpop.eup %3403 }
0x1221   : > { %v1621_v38 = vadd.f32 1.0, %v3404_v35  ;;  %v1876_v35 = vsub.f32 %v4173_v63, %v1875_v53 }
0x1223   : > { %3405 = vrcp.f32 %v1621_v38  ;;  %v1883_v38 = vsub.f32 %v4175_v42, %v1882_v40 }
0x122d   : > { %v3406_v56 = vpop.eup %3405 }
0x122e   : > { %v1625_v19 = vmul.f32 %v3406_v56, %v1522_v47 }
0x1291   : > { %v1628_v46 = vpop.permute.xlu1 %1627 }
0x1292   : > { %v1630_v23 = vmul.f32 %v3406_v56, %v1628_v46  ;;  %v1877_v46 = vand.u32 4294901760, %v1876_v35 }
0x1294   : > { %1632 = vrot.lane.b32.xlu0 %v1630_v23, %s3476_s5  ;;  %v1884_v23 = vand.u32 4294901760, %v1883_v38 }
0x1306   : > { %v1633_v57 = vpop.permute.xlu0 %1632 }
0x1307   : > { %v1635_v62 = vadd.f32 %v1633_v57, %v1625_v19  ;;  %v3275_v19 = vpack.c.bf16 %v1884_v23, %v1877_v46  ;;  %v3278_v57 = vpack.c.bf16 %v4165_v18, %v4163_v43 }
0x1309   : > { %3407 = vtanh.f32 %v1635_v62 }
0x1313   : > { %v3408_v27 = vpop.eup %3407 }
0x1314   : > { %1638 = vrot.lane.b32.xlu1 %v3408_v27, %s3476_s5  ;;  %v4191_v27 = vpack.c.bf16 %v1868_v50, %v1861_v31 }
0x1386   : > { %v1639_v2 = vpop.permute.xlu1 %1638 }
0x1387   : > { %v1641_v41 = vmul.f32 %v3406_v56, %v1639_v2  ;;  %v3272_v56 = vpack.c.bf16 %v1870_v60, %v1863_v61  ;;  %v4193_v2 = vpack.c.bf16 %v1882_v40, %v1875_v53 }
0x1389   : > { %1655 = vrot.lane.b32.xlu0 %v1641_v41, %s3477_s6  ;;  %v1646_v12 = vrot.slane %v1641_v41, %v4137_v10 }
0x13fb   : > { %v1656_v54 = vpop.permute.xlu0 %1655 }
0x13fc   : > { %3041 = vmatmul.mubr.msk.f32.vlgmr.msra.gmra.mrb[16].mxu1 %vm859_vm10, %v1656_v54 }
0x13fd   : > { %3051 = vmatprep.mubr.msk.f32.mxu1 %vm4502_vm0, %v3475_v1  ;;  %3267 = vmatpush3.bf16.msra.mxu1 %v4161_v39 }
0x13fe   : > { %3268 = vmatprep.subr.bf16.mxu1 %v3473_v0 }
0x1401   : > { %3270 = vmatpush3.bf16.msra.mxu1 %v4171_v36 }
0x1402   : > { %3271 = vmatprep.subr.bf16.mxu1 %v3473_v0 }
0x14cf   : > { %v1727_v4 = vpop.f32.mrb[16].mxu1 }
0x14d0   : > { %v1728_v9 = vadd.f32 %v1727_v4, %v1657_v3  ;;  %v3042_v28 = vpop.f32.mrb[17].mxu1 }
0x14d2   : > { %3409 = vtanh.f32 %v1728_v9  ;;  %v2623_v30 = vmul.f32 -1.442695, %v1728_v9 }
0x14d4   : > { %3411 = vpow2.f32 %v2623_v30 }
0x14dc   : > { %v3410_v29 = vpop.eup %3409 }
0x14dd   : > { %1740 = vrot.lane.b32.xlu1 %v3410_v29, %s3476_s5 }
0x14de   : > { %v3412_v32 = vpop.eup %3411 }
0x14df   : > { %v1734_v33 = vadd.f32 1.0, %v3412_v32 }
0x14e1   : > { %3413 = vrcp.f32 %v1734_v33 }
0x14eb   : > { %v3414_v34 = vpop.eup %3413 }
0x14ec   : > { %v1738_v13 = vmul.f32 %v3414_v34, %v1635_v62  ;;  %v3281_v62 = vpack.c.bf16 %v4175_v42, %v4173_v63 }
0x154f   : > { %v1741_v5 = vpop.permute.xlu1 %1740 }
0x1550   : > { %v1743_v11 = vmul.f32 %v3414_v34, %v1741_v5 }
0x1552   : > { %1745 = vrot.lane.b32.xlu0 %v1743_v11, %s3476_s5 }
0x1556   : > { %968 = vrot.lane.b32.xlu0 %v966_v59, %s3477_s6 }
0x155a   : > { %1196 = vrot.lane.b32.xlu0 %v1194_v14, %s3477_s6 }
0x155e   : > { %1422 = vrot.lane.b32.xlu0 %v1420_v20, %s3477_s6 }
0x1562   : > { %1648 = vrot.lane.b32.xlu0 %v1646_v12, %s3477_s6 }
0x15c4   : > { %v1746_v15 = vpop.permute.xlu0 %1745 }
0x15c5   : > { %v1748_v17 = vadd.f32 %v1746_v15, %v1738_v13 }
0x15c7   : > { %3415 = vtanh.f32 %v1748_v17 }
0x15c8   : > { %v969_v41 = vpop.permute.xlu0 %968 }
0x15c9   : > { %v971_v54 = vsel %vm962_vm3, %v969_v41, 0.0  ;;  %vm1200_vm3 = vmand %vm199_vm6, %vm972_vm7 }
0x15ca   : > { %v974_v4 = vsel %vm973_vm15, %v969_v41, %v971_v54  ;;  %vm1303_vm15 = vmand %vm175_vm5, %vm961_vm12 }
0x15cc   : > { %v1197_v29 = vpop.permute.xlu0 %1196 }
0x15d0   : > { %v1423_v11 = vpop.permute.xlu0 %1422 }
0x15d1   : > { %v3416_v8 = vpop.eup %3415 }
0x15d2   : > { %1751 = vrot.lane.b32.xlu1 %v3416_v8, %s3476_s5 }
0x15d4   : > { %v1649_v15 = vpop.permute.xlu0 %1648 }
0x15d6   : > { %1083 = vrot.lane.b32.xlu1 %v1081_v48, %s3477_s6 }
0x15da   : > { %1309 = vrot.lane.b32.xlu1 %v1307_v16, %s3477_s6 }
0x15de   : > { %1535 = vrot.lane.b32.xlu1 %v1533_v21, %s3477_s6 }
0x1644   : > { %v1752_v55 = vpop.permute.xlu1 %1751 }
0x1645   : > { %v1754_v47 = vmul.f32 %v3414_v34, %v1752_v55 }
0x1647   : > { %v1759_v51 = vrot.slane %v1754_v47, %v4137_v10 }
0x1648   : > { %v1084_v3 = vpop.permute.xlu1 %1083 }
0x1649   : > { %1761 = vrot.lane.b32.xlu1 %v1759_v51, %s3477_s6  ;;  %v1086_v9 = vsel %vm1077_vm9, %v1084_v3, %v974_v4  ;;  %vm4527_vm9 = vcmp.eq.s32.totalorder %v3573_v7, 4 }
0x164a   : > { %v1088_v28 = vsel %vm1087_vm8, %v1084_v3, %v1086_v9  ;;  %vm1313_vm0 = vmand %vm4527_vm9, %vm972_vm7 }
0x164b   : > { %v1199_v30 = vsel %vm1190_vm13, %v1197_v29, %v1088_v28  ;;  %vm4528_vm8 = vmmov %vm4527_vm9 }
0x164c   : > { %v1201_v32 = vsel %vm1200_vm3, %v1197_v29, %v1199_v30  ;;  %v1310_v33 = vpop.permute.xlu1 %1309  ;;  %vm1416_vm13 = vmand %vm4528_vm8, %vm961_vm12 }
0x164d   : > { %v1312_v34 = vsel %vm1303_vm15, %v1310_v33, %v1201_v32  ;;  %vm1426_vm3 = vmand %vm175_vm5, %vm972_vm7 }
0x164e   : > { %v1314_v5 = vsel %vm1313_vm0, %v1310_v33, %v1312_v34  ;;  %vm1529_vm9 = vmand %vm199_vm6, %vm961_vm12 }
0x164f   : > { %v1425_v59 = vsel %vm1416_vm13, %v1423_v11, %v1314_v5  ;;  %vm1539_vm15 = vmand %vm159_vm4, %vm972_vm7 }
0x1650   : > { %v1427_v14 = vsel %vm1426_vm3, %v1423_v11, %v1425_v59  ;;  %v1536_v20 = vpop.permute.xlu1 %1535  ;;  %vm1642_vm0 = vmand %vm211_vm11, %vm961_vm12  ;;  %vm2270_vm11 = vcmask 36864   ;;  %v2333_v11 = vsub.s32 2, %v3573_v7 }
0x1651   : > { %v1538_v12 = vsel %vm1529_vm9, %v1536_v20, %v1427_v14  ;;  %vm1652_vm5 = vmand %vm143_vm2, %vm972_vm7  ;;  %vm4529_vm2 = vmmov 0  }
0x1652   : > { %v1540_v13 = vsel %vm1539_vm15, %v1536_v20, %v1538_v12  ;;  %vm1755_vm6 = vmand %vm223_vm14, %vm961_vm12  ;;  %vm4300_vm14 = vcmp.eq.s32.totalorder %v3573_v7, %v3571_v6  ;;  %vm2470_vm15 = vcmask 36896  }
0x1653   : > { %v1651_v17 = vsel %vm1642_vm0, %v1649_v15, %v1540_v13  ;;  %vm1765_vm4 = vmand %vm127_vm1, %vm972_vm7  ;;  %vm2267_vm1 = vcmp.eq.f32.partialorder %v4288_v44, 3.0 }
0x1654   : > { %v1653_v8 = vsel %vm1652_vm5, %v1649_v15, %v1651_v17  ;;  %v2268_v37 = vsel %vm2267_vm1, 0.0, %v3478_v58  ;;  %vm2504_vm5 = vcmask 39936  }
0x1655   : > { %v2269_v31 = vadd.f32 %v2268_v37, %v4291_v45 }
0x16bb   : > { %v1762_v48 = vpop.permute.xlu1 %1761 }
0x16bc   : > { %v1764_v16 = vsel %vm1755_vm6, %v1762_v48, %v1653_v8 }
0x16bd   : > { %v1766_v21 = vsel %vm1765_vm4, %v1762_v48, %v1764_v16 }
0x16be   : > { %v1777_v22 = vsel %vm859_vm10, %v1766_v21, 0 }
0x16bf   : > { %v1848_v24 = vand.u32 4294901760, %v1777_v22 }
0x16c1   : > { %v1849_v25 = vsub.f32 %v1777_v22, %v1848_v24 }
0x16c3   : > { %v1850_v26 = vand.u32 4294901760, %v1849_v25 }
0x16c5   : > { %v1851_v43 = vsub.f32 %v1849_v25, %v1850_v26 }
0x16c7   : > { %v1852_v18 = vand.u32 4294901760, %v1851_v43 }
0x16c9   : > { %3052 = vmatmul.mubr.f32.vlgmr.msra.gmra.mrb[18].mxu1 %v1852_v18 }
0x16ca   : > { %3273 = vmatpush3.bf16.msra.mxu1 %v3272_v56  ;;  %3062 = vmatprep.mubr.msk.f32.mxu1 %vm4529_vm2, %v3475_v1 }
0x16cb   : > { %3274 = vmatprep.subr.bf16.mxu1 %v3473_v0 }
0x16ce   : > { %3276 = vmatpush3.bf16.msra.mxu1 %v3275_v19 }
0x16cf   : > { %3277 = vmatprep.subr.bf16.mxu1 %v3473_v0 }
0x16d1   : > { %3063 = vmatmul.mubr.f32.vlgmr.msra.gmra.mrb[18].mxu1 %v1848_v24 }
0x16d2   : > { %3279 = vmatpush3.bf16.msra.mxu1 %v3278_v57  ;;  %3073 = vmatprep.mubr.msk.f32.mxu1 %vm4529_vm2, %v3475_v1 }
0x16d3   : > { %3280 = vmatprep.subr.bf16.mxu1 %v3473_v0 }
0x16d6   : > { %3282 = vmatpush3.bf16.msra.mxu1 %v3281_v62 }
0x16d7   : > { %3283 = vmatprep.subr.bf16.mxu1 %v3473_v0 }
0x16d9   : > { %3074 = vmatmul.mubr.f32.vlgmr.msra.gmra.mrb[18].mxu1 %v1849_v25  ;;  %v2359_v25 = vsub.s32 3, %v3573_v7 }
0x16da   : > { %3285 = vmatpush3.bf16.msra.mxu1 %v4161_v39  ;;  %3084 = vmatprep.mubr.msk.f32.mxu1 %vm4529_vm2, %v3475_v1 }
0x16db   : > { %3286 = vmatprep.subr.bf16.mxu1 %v3473_v0 }
0x16de   : > { %3288 = vmatpush3.bf16.msra.mxu1 %v4171_v36 }
0x16df   : > { %3289 = vmatprep.subr.bf16.mxu1 %v3473_v0 }
0x16e1   : > { %3085 = vmatmul.mubr.f32.vlgmr.msra.gmra.mrb[18].mxu1 %v1850_v26 }
0x16e2   : > { %3291 = vmatpush3.bf16.msra.mxu1 %v4191_v27  ;;  %3095 = vmatprep.mubr.msk.f32.mxu1 %vm4529_vm2, %v3475_v1 }
0x16e3   : > { %3292 = vmatprep.subr.bf16.mxu1 %v3473_v0 }
0x16e6   : > { %3294 = vmatpush3.bf16.msra.mxu1 %v4193_v2 }
0x16e7   : > { %3295 = vmatprep.subr.bf16.mxu1 %v3473_v0 }
0x16e9   : > { %3096 = vmatmul.mubr.f32.vlgmr.msra.gmra.mrb[18].mxu1 %v1848_v24 }
0x16ea   : > { %3297 = vmatpush3.bf16.msra.mxu1 %v4161_v39  ;;  %3106 = vmatprep.mubr.msk.f32.mxu1 %vm4529_vm2, %v3475_v1  ;;  %v2271_v39 = vsel %vm2270_vm11, %v2269_v31, -inf }
0x16eb   : > { %3298 = vmatprep.subr.bf16.mxu1 %v3473_v0  ;;  %v2272_v1 = vrot.slane %v2271_v39, 4 }
0x16ed   : > { %v2273_v50 = vmax.f32 %v2271_v39, %v2272_v1 }
0x16ee   : > { %3300 = vmatpush3.bf16.msra.mxu1 %v4171_v36  ;;  %v2624_v36 = vld [vmem:[#allocation4 + $0x8b] ss:$0 sm:$0xff] }
0x16ef   : > { %v2274_v0 = vrot.slane %v2273_v50, 2 }
0x16f1   : > { %3107 = vmatmul.mubr.f32.vlgmr.msra.gmra.mrb[18].mxu1 %v1848_v24  ;;  %v2275_v55 = vmax.f32 %v2273_v50, %v2274_v0 }
0x16f3   : > { %v2276_v47 = vrot.slane %v2275_v55, 1 }
0x16f5   : > { %v2277_v63 = vmax.f32 %v2275_v55, %v2276_v47 }
0x17c4   : > { %v2260_v42 = vpop.f32.mrb[18].mxu1 }
0x17c5   : > { %v4295_v49 = vadd.f32 %v2624_v36, %v2260_v42  ;;  %v3108_v52 = vpop.f32.mrb[19].mxu1 }
0x17c7   : > { %v2278_v51 = vadd.f32 %v4295_v49, %v2277_v63  ;;  %v2385_v63 = vsub.s32 4, %v3573_v7 }
0x17c9   : > { %v2282_v40 = vrot.slane %v2278_v51, %v4137_v10  ;;  %v2307_v10 = vsub.s32 1, %v3573_v7 }
0x17cb   : > { %v2283_v61 = vsel %vm4300_vm14, %v2282_v40, 0.0 }
0x17cc   : > { %v2284_v60 = vsel %vm2270_vm11, %v2283_v61, 0.0 }
0x17cd   : > { %2285 = vadd.xlane.f32.xlu0 %v2284_v60 }
0x185a   : > { %v2286_v35 = vpop.xlane.xlu0 %2285 }
0x185b   : > { %v4309_v38 = vadd.f32 %v2286_v35, %v4291_v45 }
0x185d   : > { %v2288_v56 = vsel %vm2270_vm11, %v4309_v38, -inf }
0x185e   : > { %v2289_v46 = vrot.slane %v2288_v56, 4 }
0x1860   : > { %v2290_v23 = vmax.f32 %v2288_v56, %v2289_v46 }
0x1862   : > { %v2291_v19 = vrot.slane %v2290_v23, 2 }
0x1864   : > { %v2292_v57 = vmax.f32 %v2290_v23, %v2291_v19 }
0x1866   : > { %v2293_v62 = vrot.slane %v2292_v57, 1 }
0x1868   : > { %v4313_v27 = vmax.f32 %v2292_v57, %v2293_v62 }
0x186a   : > { %vm2295_vm10 = vcmp.eq.f32.partialorder %v4309_v38, %v4313_v27  ;;  %v2304_v2 = vadd.f32 %v4295_v49, %v4313_v27 }
0x186c   : > { %v2308_v41 = vrot.slane %v2304_v2, %v2307_v10  ;;  %v2411_v10 = vsub.s32 5, %v3573_v7 }
0x186e   : > { %v2309_v54 = vsel %vm4300_vm14, %v2308_v41, 0.0 }
0x186f   : > { %v2310_v3 = vsel %vm2270_vm11, %v2309_v54, 0.0 }
0x1870   : > { %2311 = vadd.xlane.f32.xlu1 %v2310_v3 }
0x18fd   : > { %v2312_v4 = vpop.xlane.xlu1 %2311 }
0x18fe   : > { %v4324_v9 = vadd.f32 %v2312_v4, %v4291_v45 }
0x1900   : > { %v2314_v28 = vsel %vm2270_vm11, %v4324_v9, -inf }
0x1901   : > { %v2315_v29 = vrot.slane %v2314_v28, 4 }
0x1903   : > { %v2316_v30 = vmax.f32 %v2314_v28, %v2315_v29 }
0x1905   : > { %v2317_v32 = vrot.slane %v2316_v30, 2 }
0x1907   : > { %v2318_v33 = vmax.f32 %v2316_v30, %v2317_v32 }
0x1909   : > { %v2319_v34 = vrot.slane %v2318_v33, 1 }
0x190b   : > { %v4328_v5 = vmax.f32 %v2318_v33, %v2319_v34 }
0x190d   : > { %vm2321_vm12 = vcmp.eq.f32.partialorder %v4324_v9, %v4328_v5  ;;  %v2330_v59 = vadd.f32 %v4295_v49, %v4328_v5  ;;  %v2296_v9 = vsel %vm2295_vm10, %v4288_v44, 5.0  ;;  %vm2508_vm10 = vcmp.eq.s32.totalorder %v3571_v6, 7 }
0x190e   : > { %v2297_v5 = vsel %vm2270_vm11, %v2296_v9, inf }
0x190f   : > { %v2334_v14 = vrot.slane %v2330_v59, %v2333_v11 }
0x1911   : > { %v2335_v20 = vsel %vm4300_vm14, %v2334_v14, 0.0  ;;  %v2437_v14 = vsub.s32 6, %v3573_v7 }
0x1912   : > { %v2336_v12 = vsel %vm2270_vm11, %v2335_v20, 0.0 }
0x1913   : > { %2337 = vadd.xlane.f32.xlu0 %v2336_v12 }
0x19a0   : > { %v2338_v13 = vpop.xlane.xlu0 %2337 }
0x19a1   : > { %v4339_v15 = vadd.f32 %v2338_v13, %v4291_v45 }
0x19a3   : > { %v2340_v17 = vsel %vm2270_vm11, %v4339_v15, -inf }
0x19a4   : > { %v2341_v8 = vrot.slane %v2340_v17, 4 }
0x19a6   : > { %v2342_v48 = vmax.f32 %v2340_v17, %v2341_v8 }
0x19a8   : > { %v2343_v16 = vrot.slane %v2342_v48, 2 }
0x19aa   : > { %v2344_v21 = vmax.f32 %v2342_v48, %v2343_v16 }
0x19ac   : > { %v2345_v22 = vrot.slane %v2344_v21, 1 }
0x19ae   : > { %v4343_v24 = vmax.f32 %v2344_v21, %v2345_v22 }
0x19b0   : > { %vm2347_vm7 = vcmp.eq.f32.partialorder %v4339_v15, %v4343_v24  ;;  %v2356_v26 = vadd.f32 %v4295_v49, %v4343_v24  ;;  %v2322_v15 = vsel %vm2321_vm12, %v4288_v44, 5.0 }
0x19b1   : > { %v2323_v24 = vsel %vm2270_vm11, %v2322_v15, inf }
0x19b2   : > { %v2360_v43 = vrot.slane %v2356_v26, %v2359_v25 }
0x19b4   : > { %v2361_v18 = vsel %vm4300_vm14, %v2360_v43, 0.0 }
0x19b5   : > { %v2362_v58 = vsel %vm2270_vm11, %v2361_v18, 0.0 }
0x19b6   : > { %2363 = vadd.xlane.f32.xlu0 %v2362_v58  ;;  %v2463_v58 = vsub.s32 7, %v3573_v7 }
0x1a43   : > { %v2364_v37 = vpop.xlane.xlu0 %2363 }
0x1a44   : > { %v4354_v31 = vadd.f32 %v2364_v37, %v4291_v45 }
0x1a46   : > { %v2366_v39 = vsel %vm2270_vm11, %v4354_v31, -inf }
0x1a47   : > { %v2367_v1 = vrot.slane %v2366_v39, 4 }
0x1a49   : > { %v2368_v50 = vmax.f32 %v2366_v39, %v2367_v1 }
0x1a4b   : > { %v2369_v0 = vrot.slane %v2368_v50, 2 }
0x1a4d   : > { %v2370_v55 = vmax.f32 %v2368_v50, %v2369_v0  ;;  %v3479_v0 = vmov 4  }
0x1a4e   : > { %3351 = vset.pattern.permute.xlu1 %v3479_v0  ;;  %3352 = vset.pattern.permute.xlu0 %v3479_v0 }
0x1a4f   : > { %v2371_v47 = vrot.slane %v2370_v55, 1 }
0x1a51   : > { %v4358_v36 = vmax.f32 %v2370_v55, %v2371_v47 }
0x1a53   : > { %vm2373_vm8 = vcmp.eq.f32.partialorder %v4354_v31, %v4358_v36  ;;  %v2382_v42 = vadd.f32 %v4295_v49, %v4358_v36  ;;  %v2348_v31 = vsel %vm2347_vm7, %v4288_v44, 5.0 }
0x1a54   : > { %v2349_v36 = vsel %vm2270_vm11, %v2348_v31, inf }
0x1a55   : > { %v2386_v52 = vrot.slane %v2382_v42, %v2385_v63 }
0x1a57   : > { %v2387_v51 = vsel %vm4300_vm14, %v2386_v52, 0.0 }
0x1a58   : > { %v2388_v40 = vsel %vm2270_vm11, %v2387_v51, 0.0 }
0x1a59   : > { %2389 = vadd.xlane.f32.xlu1 %v2388_v40 }
0x1ae6   : > { %v2390_v61 = vpop.xlane.xlu1 %2389 }
0x1ae7   : > { %v4369_v60 = vadd.f32 %v2390_v61, %v4291_v45 }
0x1ae9   : > { %v2392_v35 = vsel %vm2270_vm11, %v4369_v60, -inf }
0x1aea   : > { %v2393_v56 = vrot.slane %v2392_v35, 4 }
0x1aec   : > { %v2394_v46 = vmax.f32 %v2392_v35, %v2393_v56 }
0x1aee   : > { %v2395_v23 = vrot.slane %v2394_v46, 2 }
0x1af0   : > { %v2396_v19 = vmax.f32 %v2394_v46, %v2395_v23 }
0x1af2   : > { %v2397_v57 = vrot.slane %v2396_v19, 1 }
0x1af4   : > { %v4373_v62 = vmax.f32 %v2396_v19, %v2397_v57 }
0x1af6   : > { %vm2399_vm13 = vcmp.eq.f32.partialorder %v4369_v60, %v4373_v62  ;;  %v2408_v2 = vadd.f32 %v4295_v49, %v4373_v62  ;;  %v2374_v60 = vsel %vm2373_vm8, %v4288_v44, 5.0  ;;  %vm2488_vm8 = vcmp.eq.s32.totalorder %v3571_v6, 0 }
0x1af7   : > { %v2375_v62 = vsel %vm2270_vm11, %v2374_v60, inf }
0x1af8   : > { %v2412_v41 = vrot.slane %v2408_v2, %v2411_v10  ;;  %v2376_v0 = vrot.slane %v2375_v62, 4 }
0x1afa   : > { %v2413_v54 = vsel %vm4300_vm14, %v2412_v41, 0.0 }
0x1afb   : > { %v2414_v3 = vsel %vm2270_vm11, %v2413_v54, 0.0 }
0x1afc   : > { %2415 = vadd.xlane.f32.xlu0 %v2414_v3 }
0x1b89   : > { %v2416_v4 = vpop.xlane.xlu0 %2415 }
0x1b8a   : > { %v4384_v28 = vadd.f32 %v2416_v4, %v4291_v45 }
0x1b8c   : > { %v2418_v29 = vsel %vm2270_vm11, %v4384_v28, -inf }
0x1b8d   : > { %v2419_v30 = vrot.slane %v2418_v29, 4 }
0x1b8f   : > { %v2420_v32 = vmax.f32 %v2418_v29, %v2419_v30  ;;  %v4414_v29 = vcvt.s32.f32 %v3571_v6 }
0x1b91   : > { %v2421_v33 = vrot.slane %v2420_v32, 2 }
0x1b93   : > { %v2422_v34 = vmax.f32 %v2420_v32, %v2421_v33 }
0x1b95   : > { %v2423_v11 = vrot.slane %v2422_v34, 1 }
0x1b97   : > { %v4388_v59 = vmax.f32 %v2422_v34, %v2423_v11 }
0x1b99   : > { %vm2425_vm3 = vcmp.eq.f32.partialorder %v4384_v28, %v4388_v59  ;;  %v2434_v20 = vadd.f32 %v4295_v49, %v4388_v59  ;;  %v2400_v28 = vsel %vm2399_vm13, %v4288_v44, 5.0  ;;  %vm2515_vm13 = vcmp.eq.s32.totalorder %v3571_v6, 6 }
0x1b9a   : > { %v2426_v11 = vsel %vm2425_vm3, %v4288_v44, 5.0  ;;  %v2401_v59 = vsel %vm2270_vm11, %v2400_v28, inf  ;;  %vm2522_vm3 = vcmp.eq.s32.totalorder %v3571_v6, 5 }
0x1b9b   : > { %v2438_v12 = vrot.slane %v2434_v20, %v2437_v14  ;;  %v2427_v14 = vsel %vm2270_vm11, %v2426_v11, inf  ;;  %v2298_v11 = vrot.slane %v2297_v5, 4 }
0x1b9c   : > { %v2428_v20 = vrot.slane %v2427_v14, 4 }
0x1b9d   : > { %v2439_v13 = vsel %vm4300_vm14, %v2438_v12, 0.0 }
0x1b9e   : > { %v2440_v17 = vsel %vm2270_vm11, %v2439_v13, 0.0  ;;  %v2429_v12 = vmin.f32 %v2427_v14, %v2428_v20  ;;  %v2299_v14 = vmin.f32 %v2297_v5, %v2298_v11 }
0x1b9f   : > { %2441 = vadd.xlane.f32.xlu1 %v2440_v17 }
0x1ba0   : > { %v2430_v13 = vrot.slane %v2429_v12, 2  ;;  %v2300_v20 = vrot.slane %v2299_v14, 2 }
0x1ba2   : > { %v2431_v17 = vmin.f32 %v2429_v12, %v2430_v13  ;;  %v2301_v12 = vmin.f32 %v2299_v14, %v2300_v20 }
0x1ba4   : > { %v2302_v13 = vrot.slane %v2301_v12, 1 }
0x1c2c   : > { %v2442_v8 = vpop.xlane.xlu1 %2441 }
0x1c2d   : > { %v2443_v48 = vadd.f32 %v2442_v8, %v4291_v45  ;;  %v2432_v8 = vrot.slane %v2431_v17, 1 }
0x1c2f   : > { %v2444_v16 = vsel %vm2270_vm11, %v2443_v48, -inf }
0x1c30   : > { %v2445_v21 = vrot.slane %v2444_v16, 4 }
0x1c32   : > { %v2446_v22 = vmax.f32 %v2444_v16, %v2445_v21  ;;  %v2433_v16 = vmin.f32 %v2431_v17, %v2432_v8  ;;  %v2303_v8 = vmin.f32 %v2301_v12, %v2302_v13 }
0x1c34   : > { %v2447_v25 = vrot.slane %v2446_v22, 2 }
0x1c36   : > { %v2448_v26 = vmax.f32 %v2446_v22, %v2447_v25  ;;  %v2402_v25 = vrot.slane %v2401_v59, 4 }
0x1c38   : > { %v2449_v43 = vrot.slane %v2448_v26, 1 }
0x1c3a   : > { %v2450_v18 = vmax.f32 %v2448_v26, %v2449_v43  ;;  %v2403_v26 = vmin.f32 %v2401_v59, %v2402_v25 }
0x1c3c   : > { %vm2451_vm9 = vcmp.eq.f32.partialorder %v2443_v48, %v2450_v18  ;;  %v2460_v37 = vadd.f32 %v4295_v49, %v2450_v18  ;;  %v2404_v43 = vrot.slane %v2403_v26, 2 }
0x1c3e   : > { %v2464_v39 = vrot.slane %v2460_v37, %v2463_v58  ;;  %v2405_v18 = vmin.f32 %v2403_v26, %v2404_v43 }
0x1c40   : > { %v2465_v1 = vsel %vm4300_vm14, %v2464_v39, 0.0  ;;  %v2406_v58 = vrot.slane %v2405_v18, 1 }
0x1c41   : > { %v2466_v50 = vsel %vm2270_vm11, %v2465_v1, 0.0 }
0x1c42   : > { %2467 = vadd.xlane.f32.xlu0 %v2466_v50  ;;  %v2407_v39 = vmin.f32 %v2405_v18, %v2406_v58 }
0x1ccf   : > { %v2468_v55 = vpop.xlane.xlu0 %2467 }
0x1cd0   : > { %v2469_v47 = vadd.f32 %v2468_v55, %v4291_v45  ;;  %v2452_v45 = vsel %vm2451_vm9, %v4288_v44, 5.0  ;;  %v2377_v55 = vmin.f32 %v2375_v62, %v2376_v0  ;;  %vm2529_vm9 = vcmp.eq.s32.totalorder %v3571_v6, 4 }
0x1cd1   : > { %v2453_v10 = vsel %vm2270_vm11, %v2452_v45, inf  ;;  %vm2495_vm11 = vcmp.eq.s32.totalorder %v3571_v6, 8 }
0x1cd2   : > { %v2471_v63 = vsel %vm2470_vm15, %v2469_v47, -inf  ;;  %v2454_v2 = vrot.slane %v2453_v10, 4 }
0x1cd3   : > { %v2472_v42 = vrot.slane %v2471_v63, 4 }
0x1cd4   : > { %v2455_v41 = vmin.f32 %v2453_v10, %v2454_v2  ;;  %v2324_v10 = vrot.slane %v2323_v24, 4 }
0x1cd5   : > { %v2473_v7 = vmax.f32 %v2471_v63, %v2472_v42 }
0x1cd6   : > { %v2456_v54 = vrot.slane %v2455_v41, 2  ;;  %v2325_v2 = vmin.f32 %v2323_v24, %v2324_v10 }
0x1cd7   : > { %v2474_v52 = vrot.slane %v2473_v7, 2 }
0x1cd8   : > { %v2457_v3 = vmin.f32 %v2455_v41, %v2456_v54  ;;  %v2326_v41 = vrot.slane %v2325_v2, 2 }
0x1cd9   : > { %v2475_v51 = vmax.f32 %v2473_v7, %v2474_v52 }
0x1cda   : > { %v2458_v4 = vrot.slane %v2457_v3, 1  ;;  %v2327_v54 = vmin.f32 %v2325_v2, %v2326_v41 }
0x1cdb   : > { %v2476_v49 = vrot.slane %v2475_v51, 1 }
0x1cdc   : > { %v2459_v32 = vmin.f32 %v2457_v3, %v2458_v4  ;;  %v2328_v3 = vrot.slane %v2327_v54, 1 }
0x1cdd   : > { %v4406_v40 = vmax.f32 %v2475_v51, %v2476_v49 }
0x1cdf   : > { %vm2478_vm0 = vcmp.eq.f32.partialorder %v2469_v47, %v4406_v40  ;;  %v2378_v47 = vrot.slane %v2377_v55, 2 }
0x1ce0   : > { %v2479_v53 = vsel %vm2478_vm0, %v4288_v44, 5.0  ;;  %vm2543_vm0 = vcmp.eq.s32.totalorder %v3571_v6, 2 }
0x1ce1   : > { %v2480_v61 = vsel %vm2470_vm15, %v2479_v53, inf  ;;  %v2379_v63 = vmin.f32 %v2377_v55, %v2378_v47  ;;  %v2350_v53 = vrot.slane %v2349_v36, 4  ;;  %vm2536_vm15 = vcmp.eq.s32.totalorder %v3571_v6, 3 }
0x1ce2   : > { %v2481_v35 = vrot.slane %v2480_v61, 4 }
0x1ce3   : > { %v2380_v42 = vrot.slane %v2379_v63, 1 }
0x1ce4   : > { %v2482_v56 = vmin.f32 %v2480_v61, %v2481_v35  ;;  %v2351_v61 = vmin.f32 %v2349_v36, %v2350_v53 }
0x1ce5   : > { %v2381_v52 = vmin.f32 %v2379_v63, %v2380_v42 }
0x1ce6   : > { %v2483_v46 = vrot.slane %v2482_v56, 2  ;;  %v2352_v35 = vrot.slane %v2351_v61, 2 }
0x1ce8   : > { %v2484_v23 = vmin.f32 %v2482_v56, %v2483_v46  ;;  %v2353_v56 = vmin.f32 %v2351_v61, %v2352_v35 }
0x1cea   : > { %v2485_v19 = vrot.slane %v2484_v23, 1  ;;  %v2354_v46 = vrot.slane %v2353_v56, 1 }
0x1cec   : > { %v2486_v57 = vmin.f32 %v2484_v23, %v2485_v19  ;;  %v2355_v19 = vmin.f32 %v2353_v56, %v2354_v46 }
0x1cee   : > { %2498 = vperm.xlu1 %3351, %v2486_v57  }
0x1d6d   : > { %v4416_v30 = vpop.permute.xlu1 %2498 }
0x1d6e   : > { %vm2502_vm6 = vcmp.eq.f32.partialorder %v4414_v29, %v4416_v30 }
0x1d6f   : > { %v2503_v33 = vsel %vm2502_vm6, %v2459_v32, 0.0  ;;  %v2329_v32 = vmin.f32 %v2327_v54, %v2328_v3 }
0x1d70   : > { %v2505_v34 = vsel %vm2504_vm5, %v2503_v33, 0.0 }
0x1d71   : > { %2506 = vadd.xlane.f32.xlu0 %v2505_v34 }
0x1dfe   : > { %v4426_v48 = vpop.xlane.xlu0 %2506 }
0x1dff   : > { %vm2510_vm4 = vcmp.eq.f32.partialorder %v4414_v29, %v4426_v48 }
0x1e00   : > { %v2511_v21 = vsel %vm2510_vm4, %v2433_v16, 0.0 }
0x1e01   : > { %v2512_v22 = vsel %vm2504_vm5, %v2511_v21, 0.0 }
0x1e02   : > { %2513 = vadd.xlane.f32.xlu0 %v2512_v22 }
0x1e8f   : > { %v4436_v37 = vpop.xlane.xlu0 %2513 }
0x1e90   : > { %vm2517_vm2 = vcmp.eq.f32.partialorder %v4414_v29, %v4436_v37 }
0x1e91   : > { %v2518_v1 = vsel %vm2517_vm2, %v2407_v39, 0.0 }
0x1e92   : > { %v2519_v50 = vsel %vm2504_vm5, %v2518_v1, 0.0 }
0x1e93   : > { %2520 = vadd.xlane.f32.xlu0 %v2519_v50 }
0x1f20   : > { %v2521_v7 = vpop.xlane.xlu0 %2520 }
0x1f21   : > { %vm2524_vm1 = vcmp.eq.f32.partialorder %v4414_v29, %v2521_v7 }
0x1f22   : > { %v2525_v51 = vsel %vm2524_vm1, %v2381_v52, 0.0 }
0x1f23   : > { %v2526_v49 = vsel %vm2504_vm5, %v2525_v51, 0.0 }
0x1f24   : > { %2527 = vadd.xlane.f32.xlu0 %v2526_v49 }
0x1fb1   : > { %v2528_v23 = vpop.xlane.xlu0 %2527 }
0x1fb2   : > { %vm2531_vm14 = vcmp.eq.f32.partialorder %v4414_v29, %v2528_v23 }
0x1fb3   : > { %v2532_v57 = vsel %vm2531_vm14, %v2355_v19, 0.0 }
0x1fb4   : > { %v2533_v45 = vsel %vm2504_vm5, %v2532_v57, 0.0 }
0x1fb5   : > { %2534 = vadd.xlane.f32.xlu1 %v2533_v45 }
0x2042   : > { %v2535_v4 = vpop.xlane.xlu1 %2534 }
0x2043   : > { %vm2538_vm7 = vcmp.eq.f32.partialorder %v4414_v29, %v2535_v4 }
0x2044   : > { %v2539_v33 = vsel %vm2538_vm7, %v2329_v32, 0.0 }
0x2045   : > { %v2540_v34 = vsel %vm2504_vm5, %v2539_v33, 0.0 }
0x2046   : > { %2541 = vadd.xlane.f32.xlu0 %v2540_v34 }
0x205c   : > { %2491 = vperm.xlu0 %3352, %v4406_v40  }
0x20d3   : > { %v2542_v17 = vpop.xlane.xlu0 %2541 }
0x20d4   : > { %vm2545_vm12 = vcmp.eq.f32.partialorder %v4414_v29, %v2542_v17 }
0x20d5   : > { %v2546_v16 = vsel %vm2545_vm12, %v2303_v8, 0.0 }
0x20d6   : > { %v2547_v40 = vsel %vm2504_vm5, %v2546_v16, 0.0  ;;  %vm2550_vm5 = vcmp.eq.s32.totalorder %v3571_v6, 1 }
0x20d7   : > { %2548 = vadd.xlane.f32.xlu1 %v2547_v40 }
0x20db   : > { %v2492_v44 = vpop.permute.xlu0 %2491 }
0x20dc   : > { %v2494_v38 = vsel %vm2488_vm8, %v2492_v44, 0.0 }
0x20dd   : > { %v2501_v27 = vsel %vm2495_vm11, %v4416_v30, %v2494_v38 }
0x20de   : > { %v2509_v21 = vsel %vm2508_vm10, %v4426_v48, %v2501_v27 }
0x20df   : > { %v2516_v29 = vsel %vm2515_vm13, %v4436_v37, %v2509_v21 }
0x20e0   : > { %v2523_v22 = vsel %vm2522_vm3, %v2521_v7, %v2516_v29 }
0x20e1   : > { %v2530_v28 = vsel %vm2529_vm9, %v2528_v23, %v2523_v22 }
0x20e2   : > { %v2537_v59 = vsel %vm2536_vm15, %v2535_v4, %v2530_v28 }
0x20e3   : > { %v2544_v30 = vsel %vm2543_vm0, %v2542_v17, %v2537_v59 }
0x2164   : > { %v2549_v48 = vpop.xlane.xlu1 %2548 }
0x2165   : > { %v2551_v25 = vsel %vm2550_vm5, %v2549_v48, %v2544_v30 }
0x2166   : > { %2552 = vst [vmem:[%s112_s9] sm:$0x1] %v2551_v25 }
0x2167 PF: > { %s17_s19 = sadd.s32 1, %s3467_s19  }
0x2168   : > { %p14_p6 = scmp.ge.s32.totalorder %s17_s19, 6  }
0x216a   :  { %16 = sbr.rel (!%p14_p6) target bundleno = 13 (0xd), region = 56 }
0x2171   :  { %2570 = vsyncpa [#allocation5], 1 }
0x2172   :  { %2572 = vsyncpa [#allocation5 + $0x1], 1 }

</bundles_post_ra>
